<compile_context>
chip_gen: v5e
topology: v5e:2x2
jax: 0.10.0
libtpu: 0.0.40
codegen_flags: <defaults>
</compile_context>

<pallas_src>
import functools

import jax
import jax.numpy as jnp
from jax.experimental import pallas as pl
from jax.experimental.pallas import tpu as pltpu


def _coordatt_kernel(x_ref, pkc_ref, pkm_ref, pkw_ref, out_ref, *, H, W, C, K, mip):
    # x_ref:   (H*W, C)   one batch element, NHWC flattened over (H, W)
    # pkc_ref: (2K+4, C)  rows [0:K]=wh taps, [K:2K]=ww taps,
    #                     rows 2K..2K+3 = sh, bh, sw, bw (folded eval BN)
    # pkm_ref: (C+1, mip) rows [0:C]=w1*s1 (BN1 folded), row C = b1*s1 + t1
    # pkw_ref: (mip+1,2C) rows [0:mip]=[w2 | w3], row mip = [b2 | b3]
    wh = pkc_ref[0:K, :]                                    # (K, C) taps for 1x7
    ww = pkc_ref[K:2 * K, :]                                # (K, C) taps for 7x1

    # Depthwise convs via tap accumulation on contiguous (W, C) row chunks:
    #   xh[i, c] = sum_j x[i, j, c] * wh[j, c]   (Linear_h, 1x7 over W)
    #   xw[j, c] = sum_i x[i, j, c] * ww[i, c]   (Linear_w, 7x1 over H)
    xh_rows = []
    acc_w = None
    for i in range(H):
        chunk = x_ref[i * W:(i + 1) * W, :]                 # (W, C) contiguous rows
        term = chunk * ww[i:i + 1, :]                       # ww tap i (broadcast row)
        acc_w = term if acc_w is None else acc_w + term
        xh_rows.append(jnp.sum(chunk * wh, axis=0, keepdims=True))   # (1, C)

    sh = pkc_ref[2 * K + 0:2 * K + 1, :]
    bh = pkc_ref[2 * K + 1:2 * K + 2, :]
    sw = pkc_ref[2 * K + 2:2 * K + 3, :]
    bw = pkc_ref[2 * K + 3:2 * K + 4, :]
    xh = jnp.concatenate(xh_rows, axis=0) * sh + bh         # (H, C)
    xw = acc_w * sw + bw                                    # (W, C)

    # conv1 (1x1, C->mip) + bn1 (folded) + h_swish, applied once to the
    # stacked positions.  A zero pad row keeps the x_w half 8-sublane aligned.
    pad = jnp.zeros((1, C), jnp.float32)
    y = jnp.concatenate([xh, pad, xw], axis=0)              # (H+1+W, C)
    w1f = pkm_ref[0:C, :]                                   # (C, mip)
    b1f = pkm_ref[C:C + 1, :]                               # (1, mip)
    z = jnp.dot(y, w1f, preferred_element_type=jnp.float32) + b1f
    z = z * (jnp.clip(z + 3.0, 0.0, 6.0) * (1.0 / 6.0))     # h_swish

    # Fused conv2|conv3 (mip -> 2C): one lane-dense (., 1024) matmul + sigmoid.
    w23 = pkw_ref[0:mip, :]                                 # (mip, 2C)
    b23 = pkw_ref[mip:mip + 1, :]                           # (1, 2C)
    s = jax.nn.sigmoid(
        jnp.dot(z, w23, preferred_element_type=jnp.float32) + b23)
    sig_h = s[0:H, 0:C]                                     # conv2 on x_h half
    sig_w = s[H + 1:H + 1 + W, C:2 * C]                     # conv3 on x_w half

    # out[i*W + j, c] = sig_h[i, c] * sig_w[j, c]  (the expand + multiply),
    # written as H contiguous (W, C) row groups of a lane-dense (H*W, C) slab.
    for i in range(H):
        out_ref[i * W:(i + 1) * W, :] = sig_h[i:i + 1, :] * sig_w


def pack_params(p):
    """Pack the 13 small parameter tensors into 3 DMA-friendly slabs."""
    pkc = jnp.concatenate(
        [p["wh"], p["ww"], p["sh"], p["bh"], p["sw"], p["bw"]], axis=0)  # (2K+4, C)
    w1f = p["w1"] * p["s1"]                   # fold bn1 scale into conv1 weight
    b1f = p["b1"] * p["s1"] + p["t1"]         # fold bn1 into a single bias
    pkm = jnp.concatenate([w1f, b1f], axis=0)                           # (C+1, mip)
    w23 = jnp.concatenate([p["w2"], p["w3"]], axis=1)                   # (mip, 2C)
    b23 = jnp.concatenate([p["b2"], p["b3"]], axis=1)                   # (1, 2C)
    pkw = jnp.concatenate([w23, b23], axis=0)                           # (mip+1, 2C)
    return pkc, pkm, pkw


def coord_att_head(x_nchw, pkc, pkm, pkw):
    N, C, H, W = x_nchw.shape
    K = (pkc.shape[0] - 4) // 2
    mip = pkm.shape[1]
    assert pkc.shape[1] == C and pkm.shape[0] == C + 1
    assert H == K and W == K, "CoordAtt(512,512) with 7-tap kernels forces H == W == 7"

    # NCHW -> (N, H*W, C): put the 512-channel axis on the 128-lane dimension.
    # TODO(synk): if the producer/consumer can operate in NHWC directly, drop
    # these boundary transposes entirely.
    x = jnp.transpose(x_nchw, (0, 2, 3, 1)).reshape(N, H * W, C).astype(jnp.float32)

    kernel = functools.partial(_coordatt_kernel, H=H, W=W, C=C, K=K, mip=mip)
    out_flat = pl.pallas_call(
        kernel,
        out_shape=jax.ShapeDtypeStruct((N, H * W, C), jnp.float32),
        grid_spec=pltpu.PrefetchScalarGridSpec(
            num_scalar_prefetch=0,
            grid=(N,),
            in_specs=[
                pl.BlockSpec((None, H * W, C), lambda n: (n, 0, 0)),   # x
                pl.BlockSpec((2 * K + 4, C), lambda n: (0, 0)),        # pkc
                pl.BlockSpec((C + 1, mip), lambda n: (0, 0)),          # pkm
                pl.BlockSpec((mip + 1, 2 * C), lambda n: (0, 0)),      # pkw
            ],
            out_specs=pl.BlockSpec((None, H * W, C), lambda n: (n, 0, 0)),
        ),
        compiler_params=pltpu.CompilerParams(
            dimension_semantics=("parallel",),
            allow_input_fusion=[True, False, False, False],
        ),
    )(x, pkc, pkm, pkw)

    return jnp.transpose(out_flat.reshape(N, H, W, C), (0, 3, 1, 2))   # -> NCHW


def init_params(key, C=512, mip=16, K=7):
    ks = list(jax.random.split(key, 24))
    f32 = jnp.float32

    def bn_fold(kg, kb, km, kv, n):
        gamma = 1.0 + 0.1 * jax.random.normal(kg, (n,), f32)
        beta = 0.1 * jax.random.normal(kb, (n,), f32)
        mean = 0.1 * jax.random.normal(km, (n,), f32)
        var = jax.random.uniform(kv, (n,), f32, minval=0.5, maxval=1.5)
        scale = gamma / jnp.sqrt(var + 1e-5)
        bias = beta - mean * scale
        return scale.reshape(1, n), bias.reshape(1, n)

    sh, bh = bn_fold(ks[0], ks[1], ks[2], ks[3], C)
    sw, bw = bn_fold(ks[4], ks[5], ks[6], ks[7], C)
    s1, t1 = bn_fold(ks[8], ks[9], ks[10], ks[11], mip)

    p = {
        # depthwise weights stored as (kernel_tap, channel)
        "wh": 0.2 * jax.random.normal(ks[12], (K, C), f32),
        "ww": 0.2 * jax.random.normal(ks[13], (K, C), f32),
        "sh": sh, "bh": bh, "sw": sw, "bw": bw,
        # 1x1 conv weights stored as (in, out)
        "w1": jax.random.normal(ks[14], (C, mip), f32) / jnp.sqrt(C).astype(f32),
        "b1": 0.1 * jax.random.normal(ks[15], (1, mip), f32),
        "s1": s1, "t1": t1,
        "w2": jax.random.normal(ks[16], (mip, C), f32) / jnp.sqrt(mip).astype(f32),
        "b2": 0.1 * jax.random.normal(ks[17], (1, C), f32),
        "w3": jax.random.normal(ks[18], (mip, C), f32) / jnp.sqrt(mip).astype(f32),
        "b3": 0.1 * jax.random.normal(ks[19], (1, C), f32),
    }
    return p


def reference(x, p):
    """Pure-JAX NCHW reference matching the PyTorch forward (eval-mode BN)."""
    hi = jax.lax.Precision.HIGHEST
    xh = jnp.einsum('ncij,jc->nci', x, p["wh"], precision=hi)
    xh = xh * p["sh"][0][None, :, None] + p["bh"][0][None, :, None]
    xw = jnp.einsum('ncij,ic->ncj', x, p["ww"], precision=hi)
    xw = xw * p["sw"][0][None, :, None] + p["bw"][0][None, :, None]

    def mid(y):  # y: (N, C, P)
        z = jnp.einsum('ncp,cm->nmp', y, p["w1"], precision=hi) + p["b1"][0][None, :, None]
        z = z * p["s1"][0][None, :, None] + p["t1"][0][None, :, None]
        return z * (jnp.clip(z + 3.0, 0.0, 6.0) / 6.0)

    yh, yw = mid(xh), mid(xw)
    sig_h = jax.nn.sigmoid(jnp.einsum('nmi,mc->nci', yh, p["w2"], precision=hi)
                           + p["b2"][0][None, :, None])
    sig_w = jax.nn.sigmoid(jnp.einsum('nmj,mc->ncj', yw, p["w3"], precision=hi)
                           + p["b3"][0][None, :, None])
    return sig_h[:, :, :, None] * sig_w[:, :, None, :]


if __name__ == "__main__":
    # Module constraints: CoordAtt(512, 512) with 7-tap valid kernels and the
    # .expand(-1,-1,h,w) call force C=512 and H=W=7.  Keep batch small.
    N, C, H, W = 2, 512, 7, 7
    key = jax.random.PRNGKey(0)
    kx, kp = jax.random.split(key)
    x = jax.random.normal(kx, (N, C, H, W), jnp.float32)
    params = init_params(kp, C=C, mip=max(8, C // 32), K=7)
    pkc, pkm, pkw = pack_params(params)

    fn = jax.jit(coord_att_head)
    out = jax.block_until_ready(fn(x, pkc, pkm, pkw))

    ref = jax.block_until_ready(reference(x, params))
    assert out.shape == (N, C, H, W), out.shape
    assert jnp.allclose(out, ref, rtol=1e-3, atol=1e-3), \
        float(jnp.max(jnp.abs(out - ref)))

    print("KERNEL_OK")
</pallas_src>

<mosaic_0001>
module attributes {stable_mosaic.version = 11 : i64} {
  func.func @_coordatt_kernel(%arg0: i32, %arg1: memref<1x49x512xf32, #tpu.memory_space<vmem>>, %arg2: memref<18x512xf32, #tpu.memory_space<vmem>>, %arg3: memref<513x16xf32, #tpu.memory_space<vmem>>, %arg4: memref<17x1024xf32, #tpu.memory_space<vmem>>, %arg5: memref<1x49x512xf32, #tpu.memory_space<vmem>>) attributes {dimension_semantics = [#tpu.dimension_semantics<parallel>], iteration_bounds = array<i64: 2>, scalar_prefetch = 0 : i64, scratch_operands = 0 : i64, tpu.core_type = #tpu.core_type<tc>, window_params = [{transform_indices = @transform_0, window_bounds = array<i64: 1, 49, 512>}, {pipeline_mode = #tpu.pipeline_mode<synchronous>, transform_indices = @transform_1, window_bounds = array<i64: 18, 512>}, {pipeline_mode = #tpu.pipeline_mode<synchronous>, transform_indices = @transform_2, window_bounds = array<i64: 513, 16>}, {pipeline_mode = #tpu.pipeline_mode<synchronous>, transform_indices = @transform_3, window_bounds = array<i64: 17, 1024>}, {transform_indices = @transform_4, window_bounds = array<i64: 1, 49, 512>}]} {
    %c0 = arith.constant 0 : index
    %c0_0 = arith.constant 0 : index
    %0 = vector.load %arg2[%c0, %c0_0] : memref<18x512xf32, #tpu.memory_space<vmem>>, vector<7x512xf32>
    %c7 = arith.constant 7 : index
    %c0_1 = arith.constant 0 : index
    %1 = vector.load %arg2[%c7, %c0_1] : memref<18x512xf32, #tpu.memory_space<vmem>>, vector<7x512xf32>
    %c0_2 = arith.constant 0 : index
    %c0_3 = arith.constant 0 : index
    %c0_4 = arith.constant 0 : index
    %2 = vector.load %arg1[%c0_2, %c0_3, %c0_4] : memref<1x49x512xf32, #tpu.memory_space<vmem>>, vector<1x7x512xf32>
    %3 = vector.shape_cast %2 : vector<1x7x512xf32> to vector<7x512xf32>
    %4 = vector.extract_strided_slice %1 {offsets = [0, 0], sizes = [1, 512], strides = [1, 1]} : vector<7x512xf32> to vector<1x512xf32>
    %5 = vector.broadcast %4 : vector<1x512xf32> to vector<7x512xf32>
    %6 = arith.mulf %3, %5 : vector<7x512xf32>
    %7 = arith.mulf %3, %0 : vector<7x512xf32>
    %cst = arith.constant dense<0.000000e+00> : vector<512xf32>
    %8 = vector.multi_reduction <add>, %7, %cst [0] : vector<7x512xf32> to vector<512xf32>
    %9 = vector.shape_cast %8 : vector<512xf32> to vector<1x512xf32>
    %c0_5 = arith.constant 0 : index
    %c7_6 = arith.constant 7 : index
    %c0_7 = arith.constant 0 : index
    %10 = vector.load %arg1[%c0_5, %c7_6, %c0_7] : memref<1x49x512xf32, #tpu.memory_space<vmem>>, vector<1x7x512xf32>
    %11 = vector.shape_cast %10 : vector<1x7x512xf32> to vector<7x512xf32>
    %12 = vector.extract_strided_slice %1 {offsets = [1, 0], sizes = [1, 512], strides = [1, 1]} : vector<7x512xf32> to vector<1x512xf32>
    %13 = vector.broadcast %12 : vector<1x512xf32> to vector<7x512xf32>
    %14 = arith.mulf %11, %13 : vector<7x512xf32>
    %15 = arith.addf %6, %14 : vector<7x512xf32>
    %16 = arith.mulf %11, %0 : vector<7x512xf32>
    %cst_8 = arith.constant dense<0.000000e+00> : vector<512xf32>
    %17 = vector.multi_reduction <add>, %16, %cst_8 [0] : vector<7x512xf32> to vector<512xf32>
    %18 = vector.shape_cast %17 : vector<512xf32> to vector<1x512xf32>
    %c0_9 = arith.constant 0 : index
    %c14 = arith.constant 14 : index
    %c0_10 = arith.constant 0 : index
    %19 = vector.load %arg1[%c0_9, %c14, %c0_10] : memref<1x49x512xf32, #tpu.memory_space<vmem>>, vector<1x7x512xf32>
    %20 = vector.shape_cast %19 : vector<1x7x512xf32> to vector<7x512xf32>
    %21 = vector.extract_strided_slice %1 {offsets = [2, 0], sizes = [1, 512], strides = [1, 1]} : vector<7x512xf32> to vector<1x512xf32>
    %22 = vector.broadcast %21 : vector<1x512xf32> to vector<7x512xf32>
    %23 = arith.mulf %20, %22 : vector<7x512xf32>
    %24 = arith.addf %15, %23 : vector<7x512xf32>
    %25 = arith.mulf %20, %0 : vector<7x512xf32>
    %cst_11 = arith.constant dense<0.000000e+00> : vector<512xf32>
    %26 = vector.multi_reduction <add>, %25, %cst_11 [0] : vector<7x512xf32> to vector<512xf32>
    %27 = vector.shape_cast %26 : vector<512xf32> to vector<1x512xf32>
    %c0_12 = arith.constant 0 : index
    %c21 = arith.constant 21 : index
    %c0_13 = arith.constant 0 : index
    %28 = vector.load %arg1[%c0_12, %c21, %c0_13] : memref<1x49x512xf32, #tpu.memory_space<vmem>>, vector<1x7x512xf32>
    %29 = vector.shape_cast %28 : vector<1x7x512xf32> to vector<7x512xf32>
    %30 = vector.extract_strided_slice %1 {offsets = [3, 0], sizes = [1, 512], strides = [1, 1]} : vector<7x512xf32> to vector<1x512xf32>
    %31 = vector.broadcast %30 : vector<1x512xf32> to vector<7x512xf32>
    %32 = arith.mulf %29, %31 : vector<7x512xf32>
    %33 = arith.addf %24, %32 : vector<7x512xf32>
    %34 = arith.mulf %29, %0 : vector<7x512xf32>
    %cst_14 = arith.constant dense<0.000000e+00> : vector<512xf32>
    %35 = vector.multi_reduction <add>, %34, %cst_14 [0] : vector<7x512xf32> to vector<512xf32>
    %36 = vector.shape_cast %35 : vector<512xf32> to vector<1x512xf32>
    %c0_15 = arith.constant 0 : index
    %c28 = arith.constant 28 : index
    %c0_16 = arith.constant 0 : index
    %37 = vector.load %arg1[%c0_15, %c28, %c0_16] : memref<1x49x512xf32, #tpu.memory_space<vmem>>, vector<1x7x512xf32>
    %38 = vector.shape_cast %37 : vector<1x7x512xf32> to vector<7x512xf32>
    %39 = vector.extract_strided_slice %1 {offsets = [4, 0], sizes = [1, 512], strides = [1, 1]} : vector<7x512xf32> to vector<1x512xf32>
    %40 = vector.broadcast %39 : vector<1x512xf32> to vector<7x512xf32>
    %41 = arith.mulf %38, %40 : vector<7x512xf32>
    %42 = arith.addf %33, %41 : vector<7x512xf32>
    %43 = arith.mulf %38, %0 : vector<7x512xf32>
    %cst_17 = arith.constant dense<0.000000e+00> : vector<512xf32>
    %44 = vector.multi_reduction <add>, %43, %cst_17 [0] : vector<7x512xf32> to vector<512xf32>
    %45 = vector.shape_cast %44 : vector<512xf32> to vector<1x512xf32>
    %c0_18 = arith.constant 0 : index
    %c35 = arith.constant 35 : index
    %c0_19 = arith.constant 0 : index
    %46 = vector.load %arg1[%c0_18, %c35, %c0_19] : memref<1x49x512xf32, #tpu.memory_space<vmem>>, vector<1x7x512xf32>
    %47 = vector.shape_cast %46 : vector<1x7x512xf32> to vector<7x512xf32>
    %48 = vector.extract_strided_slice %1 {offsets = [5, 0], sizes = [1, 512], strides = [1, 1]} : vector<7x512xf32> to vector<1x512xf32>
    %49 = vector.broadcast %48 : vector<1x512xf32> to vector<7x512xf32>
    %50 = arith.mulf %47, %49 : vector<7x512xf32>
    %51 = arith.addf %42, %50 : vector<7x512xf32>
    %52 = arith.mulf %47, %0 : vector<7x512xf32>
    %cst_20 = arith.constant dense<0.000000e+00> : vector<512xf32>
    %53 = vector.multi_reduction <add>, %52, %cst_20 [0] : vector<7x512xf32> to vector<512xf32>
    %54 = vector.shape_cast %53 : vector<512xf32> to vector<1x512xf32>
    %c0_21 = arith.constant 0 : index
    %c42 = arith.constant 42 : index
    %c0_22 = arith.constant 0 : index
    %55 = vector.load %arg1[%c0_21, %c42, %c0_22] : memref<1x49x512xf32, #tpu.memory_space<vmem>>, vector<1x7x512xf32>
    %56 = vector.shape_cast %55 : vector<1x7x512xf32> to vector<7x512xf32>
    %57 = vector.extract_strided_slice %1 {offsets = [6, 0], sizes = [1, 512], strides = [1, 1]} : vector<7x512xf32> to vector<1x512xf32>
    %58 = vector.broadcast %57 : vector<1x512xf32> to vector<7x512xf32>
    %59 = arith.mulf %56, %58 : vector<7x512xf32>
    %60 = arith.addf %51, %59 : vector<7x512xf32>
    %61 = arith.mulf %56, %0 : vector<7x512xf32>
    %cst_23 = arith.constant dense<0.000000e+00> : vector<512xf32>
    %62 = vector.multi_reduction <add>, %61, %cst_23 [0] : vector<7x512xf32> to vector<512xf32>
    %63 = vector.shape_cast %62 : vector<512xf32> to vector<1x512xf32>
    %c14_24 = arith.constant 14 : index
    %c0_25 = arith.constant 0 : index
    %64 = vector.load %arg2[%c14_24, %c0_25] : memref<18x512xf32, #tpu.memory_space<vmem>>, vector<1x512xf32>
    %c15 = arith.constant 15 : index
    %c0_26 = arith.constant 0 : index
    %65 = vector.load %arg2[%c15, %c0_26] : memref<18x512xf32, #tpu.memory_space<vmem>>, vector<1x512xf32>
    %c16 = arith.constant 16 : index
    %c0_27 = arith.constant 0 : index
    %66 = vector.load %arg2[%c16, %c0_27] : memref<18x512xf32, #tpu.memory_space<vmem>>, vector<1x512xf32>
    %c17 = arith.constant 17 : index
    %c0_28 = arith.constant 0 : index
    %67 = vector.load %arg2[%c17, %c0_28] : memref<18x512xf32, #tpu.memory_space<vmem>>, vector<1x512xf32>
    %68 = tpu.concatenate %9, %18, %27, %36, %45, %54, %63 in 0 : vector<1x512xf32>, vector<1x512xf32>, vector<1x512xf32>, vector<1x512xf32>, vector<1x512xf32>, vector<1x512xf32>, vector<1x512xf32> -> vector<7x512xf32>
    %69 = vector.broadcast %64 : vector<1x512xf32> to vector<7x512xf32>
    %70 = arith.mulf %68, %69 : vector<7x512xf32>
    %71 = vector.broadcast %65 : vector<1x512xf32> to vector<7x512xf32>
    %72 = arith.addf %70, %71 : vector<7x512xf32>
    %73 = vector.broadcast %66 : vector<1x512xf32> to vector<7x512xf32>
    %74 = arith.mulf %60, %73 : vector<7x512xf32>
    %75 = vector.broadcast %67 : vector<1x512xf32> to vector<7x512xf32>
    %76 = arith.addf %74, %75 : vector<7x512xf32>
    %cst_29 = arith.constant 0.000000e+00 : f32
    %77 = vector.broadcast %cst_29 : f32 to vector<1x512xf32>
    %78 = tpu.concatenate %72, %77, %76 in 0 : vector<7x512xf32>, vector<1x512xf32>, vector<7x512xf32> -> vector<15x512xf32>
    %c0_30 = arith.constant 0 : index
    %c0_31 = arith.constant 0 : index
    %79 = vector.load %arg3[%c0_30, %c0_31] : memref<513x16xf32, #tpu.memory_space<vmem>>, vector<512x16xf32>
    %c512 = arith.constant 512 : index
    %c0_32 = arith.constant 0 : index
    %80 = vector.load %arg3[%c512, %c0_32] : memref<513x16xf32, #tpu.memory_space<vmem>>, vector<1x16xf32>
    %cst_33 = arith.constant dense<0.000000e+00> : vector<15x16xf32>
    %81 = tpu.matmul %78, %79, %cst_33 {dimension_numbers = #tpu.dot_dimension_numbers<[1], [0], [0], [1], [0, 0, 1, 1], [], []>} : vector<15x512xf32>, vector<512x16xf32>, vector<15x16xf32> -> vector<15x16xf32>
    %82 = vector.broadcast %80 : vector<1x16xf32> to vector<15x16xf32>
    %83 = arith.addf %81, %82 : vector<15x16xf32>
    %cst_34 = arith.constant 3.000000e+00 : f32
    %84 = vector.broadcast %cst_34 : f32 to vector<15x16xf32>
    %85 = arith.addf %83, %84 : vector<15x16xf32>
    %cst_35 = arith.constant 0.000000e+00 : f32
    %cst_36 = arith.constant 6.000000e+00 : f32
    %86 = vector.broadcast %cst_35 : f32 to vector<15x16xf32>
    %87 = arith.maximumf %86, %85 : vector<15x16xf32>
    %88 = vector.broadcast %cst_36 : f32 to vector<15x16xf32>
    %89 = arith.minimumf %88, %87 : vector<15x16xf32>
    %cst_37 = arith.constant 0.166666672 : f32
    %90 = vector.broadcast %cst_37 : f32 to vector<15x16xf32>
    %91 = arith.mulf %89, %90 : vector<15x16xf32>
    %92 = arith.mulf %83, %91 : vector<15x16xf32>
    %c0_38 = arith.constant 0 : index
    %c0_39 = arith.constant 0 : index
    %93 = vector.load %arg4[%c0_38, %c0_39] : memref<17x1024xf32, #tpu.memory_space<vmem>>, vector<16x1024xf32>
    %c16_40 = arith.constant 16 : index
    %c0_41 = arith.constant 0 : index
    %94 = vector.load %arg4[%c16_40, %c0_41] : memref<17x1024xf32, #tpu.memory_space<vmem>>, vector<1x1024xf32>
    %cst_42 = arith.constant dense<0.000000e+00> : vector<15x1024xf32>
    %95 = tpu.matmul %92, %93, %cst_42 {dimension_numbers = #tpu.dot_dimension_numbers<[1], [0], [0], [1], [0, 0, 1, 1], [], []>} : vector<15x16xf32>, vector<16x1024xf32>, vector<15x1024xf32> -> vector<15x1024xf32>
    %96 = vector.broadcast %94 : vector<1x1024xf32> to vector<15x1024xf32>
    %97 = arith.addf %95, %96 : vector<15x1024xf32>
    %98 = arith.negf %97 : vector<15x1024xf32>
    %99 = math.exp %98 : vector<15x1024xf32>
    %cst_43 = arith.constant 1.000000e+00 : f32
    %100 = vector.broadcast %cst_43 : f32 to vector<15x1024xf32>
    %101 = arith.addf %100, %99 : vector<15x1024xf32>
    %102 = arith.divf %100, %101 : vector<15x1024xf32>
    %103 = vector.extract_strided_slice %102 {offsets = [0, 0], sizes = [7, 512], strides = [1, 1]} : vector<15x1024xf32> to vector<7x512xf32>
    %104 = vector.extract_strided_slice %102 {offsets = [8, 512], sizes = [7, 512], strides = [1, 1]} : vector<15x1024xf32> to vector<7x512xf32>
    %105 = vector.extract_strided_slice %103 {offsets = [0, 0], sizes = [1, 512], strides = [1, 1]} : vector<7x512xf32> to vector<1x512xf32>
    %106 = vector.broadcast %105 : vector<1x512xf32> to vector<7x512xf32>
    %107 = arith.mulf %106, %104 : vector<7x512xf32>
    %c0_44 = arith.constant 0 : index
    %c0_45 = arith.constant 0 : index
    %c0_46 = arith.constant 0 : index
    %108 = vector.load %arg5[%c0_44, %c0_45, %c0_46] : memref<1x49x512xf32, #tpu.memory_space<vmem>>, vector<1x7x512xf32>
    %109 = vector.shape_cast %108 : vector<1x7x512xf32> to vector<7x512xf32>
    %110 = vector.shape_cast %107 : vector<7x512xf32> to vector<1x7x512xf32>
    tpu.vector_store %arg5[%c0_44, %c0_45, %c0_46], %110 {strides = array<i32>} : memref<1x49x512xf32, #tpu.memory_space<vmem>>, vector<1x7x512xf32>,
    %111 = vector.extract_strided_slice %103 {offsets = [1, 0], sizes = [1, 512], strides = [1, 1]} : vector<7x512xf32> to vector<1x512xf32>
    %112 = vector.broadcast %111 : vector<1x512xf32> to vector<7x512xf32>
    %113 = arith.mulf %112, %104 : vector<7x512xf32>
    %c0_47 = arith.constant 0 : index
    %c7_48 = arith.constant 7 : index
    %c0_49 = arith.constant 0 : index
    %114 = vector.load %arg5[%c0_47, %c7_48, %c0_49] : memref<1x49x512xf32, #tpu.memory_space<vmem>>, vector<1x7x512xf32>
    %115 = vector.shape_cast %114 : vector<1x7x512xf32> to vector<7x512xf32>
    %116 = vector.shape_cast %113 : vector<7x512xf32> to vector<1x7x512xf32>
    tpu.vector_store %arg5[%c0_47, %c7_48, %c0_49], %116 {strides = array<i32>} : memref<1x49x512xf32, #tpu.memory_space<vmem>>, vector<1x7x512xf32>,
    %117 = vector.extract_strided_slice %103 {offsets = [2, 0], sizes = [1, 512], strides = [1, 1]} : vector<7x512xf32> to vector<1x512xf32>
    %118 = vector.broadcast %117 : vector<1x512xf32> to vector<7x512xf32>
    %119 = arith.mulf %118, %104 : vector<7x512xf32>
    %c0_50 = arith.constant 0 : index
    %c14_51 = arith.constant 14 : index
    %c0_52 = arith.constant 0 : index
    %120 = vector.load %arg5[%c0_50, %c14_51, %c0_52] : memref<1x49x512xf32, #tpu.memory_space<vmem>>, vector<1x7x512xf32>
    %121 = vector.shape_cast %120 : vector<1x7x512xf32> to vector<7x512xf32>
    %122 = vector.shape_cast %119 : vector<7x512xf32> to vector<1x7x512xf32>
    tpu.vector_store %arg5[%c0_50, %c14_51, %c0_52], %122 {strides = array<i32>} : memref<1x49x512xf32, #tpu.memory_space<vmem>>, vector<1x7x512xf32>,
    %123 = vector.extract_strided_slice %103 {offsets = [3, 0], sizes = [1, 512], strides = [1, 1]} : vector<7x512xf32> to vector<1x512xf32>
    %124 = vector.broadcast %123 : vector<1x512xf32> to vector<7x512xf32>
    %125 = arith.mulf %124, %104 : vector<7x512xf32>
    %c0_53 = arith.constant 0 : index
    %c21_54 = arith.constant 21 : index
    %c0_55 = arith.constant 0 : index
    %126 = vector.load %arg5[%c0_53, %c21_54, %c0_55] : memref<1x49x512xf32, #tpu.memory_space<vmem>>, vector<1x7x512xf32>
    %127 = vector.shape_cast %126 : vector<1x7x512xf32> to vector<7x512xf32>
    %128 = vector.shape_cast %125 : vector<7x512xf32> to vector<1x7x512xf32>
    tpu.vector_store %arg5[%c0_53, %c21_54, %c0_55], %128 {strides = array<i32>} : memref<1x49x512xf32, #tpu.memory_space<vmem>>, vector<1x7x512xf32>,
    %129 = vector.extract_strided_slice %103 {offsets = [4, 0], sizes = [1, 512], strides = [1, 1]} : vector<7x512xf32> to vector<1x512xf32>
    %130 = vector.broadcast %129 : vector<1x512xf32> to vector<7x512xf32>
    %131 = arith.mulf %130, %104 : vector<7x512xf32>
    %c0_56 = arith.constant 0 : index
    %c28_57 = arith.constant 28 : index
    %c0_58 = arith.constant 0 : index
    %132 = vector.load %arg5[%c0_56, %c28_57, %c0_58] : memref<1x49x512xf32, #tpu.memory_space<vmem>>, vector<1x7x512xf32>
    %133 = vector.shape_cast %132 : vector<1x7x512xf32> to vector<7x512xf32>
    %134 = vector.shape_cast %131 : vector<7x512xf32> to vector<1x7x512xf32>
    tpu.vector_store %arg5[%c0_56, %c28_57, %c0_58], %134 {strides = array<i32>} : memref<1x49x512xf32, #tpu.memory_space<vmem>>, vector<1x7x512xf32>,
    %135 = vector.extract_strided_slice %103 {offsets = [5, 0], sizes = [1, 512], strides = [1, 1]} : vector<7x512xf32> to vector<1x512xf32>
    %136 = vector.broadcast %135 : vector<1x512xf32> to vector<7x512xf32>
    %137 = arith.mulf %136, %104 : vector<7x512xf32>
    %c0_59 = arith.constant 0 : index
    %c35_60 = arith.constant 35 : index
    %c0_61 = arith.constant 0 : index
    %138 = vector.load %arg5[%c0_59, %c35_60, %c0_61] : memref<1x49x512xf32, #tpu.memory_space<vmem>>, vector<1x7x512xf32>
    %139 = vector.shape_cast %138 : vector<1x7x512xf32> to vector<7x512xf32>
    %140 = vector.shape_cast %137 : vector<7x512xf32> to vector<1x7x512xf32>
    tpu.vector_store %arg5[%c0_59, %c35_60, %c0_61], %140 {strides = array<i32>} : memref<1x49x512xf32, #tpu.memory_space<vmem>>, vector<1x7x512xf32>,
    %141 = vector.extract_strided_slice %103 {offsets = [6, 0], sizes = [1, 512], strides = [1, 1]} : vector<7x512xf32> to vector<1x512xf32>
    %142 = vector.broadcast %141 : vector<1x512xf32> to vector<7x512xf32>
    %143 = arith.mulf %142, %104 : vector<7x512xf32>
    %c0_62 = arith.constant 0 : index
    %c42_63 = arith.constant 42 : index
    %c0_64 = arith.constant 0 : index
    %144 = vector.load %arg5[%c0_62, %c42_63, %c0_64] : memref<1x49x512xf32, #tpu.memory_space<vmem>>, vector<1x7x512xf32>
    %145 = vector.shape_cast %144 : vector<1x7x512xf32> to vector<7x512xf32>
    %146 = vector.shape_cast %143 : vector<7x512xf32> to vector<1x7x512xf32>
    tpu.vector_store %arg5[%c0_62, %c42_63, %c0_64], %146 {strides = array<i32>} : memref<1x49x512xf32, #tpu.memory_space<vmem>>, vector<1x7x512xf32>,
    return
  }
  func.func @transform_0(%arg0: i32) -> (i32, i32, i32) {
    %c0_i32 = arith.constant 0 : i32
    %c0_i32_0 = arith.constant 0 : i32
    %c0_i32_1 = arith.constant 0 : i32
    return %arg0, %c0_i32, %c0_i32_0 : i32, i32, i32
  }
  func.func @transform_1(%arg0: i32) -> (i32, i32) {
    %c0_i32 = arith.constant 0 : i32
    %c0_i32_0 = arith.constant 0 : i32
    %c0_i32_1 = arith.constant 0 : i32
    return %c0_i32, %c0_i32_0 : i32, i32
  }
  func.func @transform_2(%arg0: i32) -> (i32, i32) {
    %c0_i32 = arith.constant 0 : i32
    %c0_i32_0 = arith.constant 0 : i32
    %c0_i32_1 = arith.constant 0 : i32
    return %c0_i32, %c0_i32_0 : i32, i32
  }
  func.func @transform_3(%arg0: i32) -> (i32, i32) {
    %c0_i32 = arith.constant 0 : i32
    %c0_i32_0 = arith.constant 0 : i32
    %c0_i32_1 = arith.constant 0 : i32
    return %c0_i32, %c0_i32_0 : i32, i32
  }
  func.func @transform_4(%arg0: i32) -> (i32, i32, i32) {
    %c0_i32 = arith.constant 0 : i32
    %c0_i32_0 = arith.constant 0 : i32
    %c0_i32_1 = arith.constant 0 : i32
    return %arg0, %c0_i32, %c0_i32_0 : i32, i32, i32
  }
}

</mosaic_0001>

<bundles_post_ra>
// kernel: coord_att_head.1
= control target key start
LH: loop header
LB: loop body
LE: loop exit
PB: predicated region body
PF: predicated region fallthrough
CT: control target
= control target key end

     0   :  { %s1942_s15 = smov 0   ;;  %s2966_s0 = inlined_call_operand.vmem [shape: f32[2,49,512], index: 0, kind: input, shape index: {}]   ;;  %s2967_s1 = inlined_call_operand.vmem [shape: f32[18,512], index: 1, kind: input, shape index: {}]   ;;  %s2968_s2 = inlined_call_operand.vmem [shape: f32[513,16], index: 2, kind: input, shape index: {}]   ;;  %s2969_s3 = inlined_call_operand.vmem [shape: f32[17,1024], index: 3, kind: input, shape index: {}]   ;;  %s2970_s4 = inlined_call_operand.vmem [shape: f32[2,49,512], index: 4, kind: output, shape index: {}]  }
   0x1 LB: > { %s1824_s16 = sadd.s32 4294967295, %s1915_s15   ;;  %p1828_p0 = scmp.ge.s32.totalorder %s1915_s15, 1  ;;  %s1915_s15 = sphi %s1942_s15, %s14_s15  }
   0x2   : > { %p162_p1 = scmp.lt.s32.totalorder %s1915_s15, 3 }
   0x4   : > { %p163_p2 = pnand %p1828_p0, %p162_p1 }
   0x6   : > { %166 = sbr.rel (%p163_p2) target bundleno = 553 (0x229), region = 36 }
   0xb   : > { %v1096_v0 = vld [vmem:[%s2968_s2 + $0x178] sm:$0xff]  ;;  %v1095_v2 = vld [vmem:[%s2968_s2 + $0x170] sm:$0xff]  ;;  %v1094_v6 = vld [vmem:[%s2968_s2 + $0x168] sm:$0xff]  ;;  %p2000_p3 = scmp.lt.s32.totalorder %s1824_s16, 1  ;;  %vm226_vm0 = vcmask 1046528   ;;  %vm283_vm1 = vcmask 1040384  }
   0xc   : > { %v1064_v1 = vld [vmem:[%s2968_s2 + $0x78] sm:$0xff]  ;;  %1161 = vmatpush.msra.mxu2 %v1096_v0  ;;  %v1063_v4 = vld [vmem:[%s2968_s2 + $0x70] sm:$0xff]  ;;  %v1062_v8 = vld [vmem:[%s2968_s2 + $0x68] sm:$0xff]  ;;  %vm404_vm2 = vcmask 1041408   ;;  %vm521_vm3 = vcmask 1042432   ;;  %vm638_vm4 = vcmask 1043456  }
   0xd   : > { %1115 = vmatpush.msra.mxu0 %v1064_v1  ;;  %v1112_v3 = vld [vmem:[%s2968_s2 + $0x1f8] sm:$0xff]  ;;  %v1111_v7 = vld [vmem:[%s2968_s2 + $0x1f0] sm:$0xff]  ;;  %v1110_v10 = vld [vmem:[%s2968_s2 + $0x1e8] sm:$0xff]  ;;  %s3044_s16 = smov (!%p2000_p3, %s1824_s16), 1  ;;  %vm755_vm5 = vcmask 1044480   ;;  %vm872_vm6 = vcmask 1045504  }
   0xe   : > { %v1080_v5 = vld [vmem:[%s2968_s2 + $0xf8] sm:$0xff]  ;;  %1184 = vmatpush.msra.mxu3 %v1112_v3  ;;  %1162 = vmatpush.msra.mxu2 %v1095_v2  ;;  %v1079_v9 = vld [vmem:[%s2968_s2 + $0xf0] sm:$0xff]  ;;  %v1093_v11 = vld [vmem:[%s2968_s2 + $0x160] sm:$0xff]  ;;  %s1867_s8 = smul.u32 224, %s3044_s16  ;;  %vm1254_vm7 = vcmask 130048  }
   0xf   : > { %1138 = vmatpush.msra.mxu1 %v1080_v5  ;;  %1116 = vmatpush.msra.mxu0 %v1063_v4  ;;  %v1061_v12 = vld [vmem:[%s2968_s2 + $0x60] sm:$0xff]  ;;  %v1078_v13 = vld [vmem:[%s2968_s2 + $0xe8] sm:$0xff]  ;;  %v1092_v16 = vld [vmem:[%s2968_s2 + $0x158] sm:$0xff] }
  0x10   : > { %1185 = vmatpush.msra.mxu3 %v1111_v7  ;;  %1163 = vmatpush.msra.mxu2 %v1094_v6  ;;  %v1109_v14 = vld [vmem:[%s2968_s2 + $0x1e0] sm:$0xff]  ;;  %v1060_v17 = vld [vmem:[%s2968_s2 + $0x58] sm:$0xff]  ;;  %v1091_v20 = vld [vmem:[%s2968_s2 + $0x150] sm:$0xff]  ;;  %s2094_s7 = scalar_lea.vmem %s2966_s0, %s1867_s8  ;;  %s2806_s12 = scalar_lea.vmem %s2970_s4, %s1867_s8 }
  0x11   : > { %1139 = vmatpush.msra.mxu1 %v1079_v9  ;;  %1117 = vmatpush.msra.mxu0 %v1062_v8  ;;  %v1077_v15 = vld [vmem:[%s2968_s2 + $0xe0] sm:$0xff]  ;;  %v1108_v18 = vld [vmem:[%s2968_s2 + $0x1d8] sm:$0xff]  ;;  %v1059_v21 = vld [vmem:[%s2968_s2 + $0x50] sm:$0xff] }
  0x12   : > { %1186 = vmatpush.msra.mxu3 %v1110_v10  ;;  %1164 = vmatpush.msra.mxu2 %v1093_v11  ;;  %v1076_v19 = vld [vmem:[%s2968_s2 + $0xd8] sm:$0xff]  ;;  %v1107_v22 = vld [vmem:[%s2968_s2 + $0x1d0] sm:$0xff]  ;;  %v1090_v24 = vld [vmem:[%s2968_s2 + $0x148] sm:$0xff] }
  0x13   : > { %1140 = vmatpush.msra.mxu1 %v1078_v13  ;;  %1118 = vmatpush.msra.mxu0 %v1061_v12  ;;  %v1075_v23 = vld [vmem:[%s2968_s2 + $0xd0] sm:$0xff]  ;;  %v1058_v25 = vld [vmem:[%s2968_s2 + $0x48] sm:$0xff]  ;;  %v1089_v28 = vld [vmem:[%s2968_s2 + $0x140] sm:$0xff] }
  0x14   : > { %1187 = vmatpush.msra.mxu3 %v1109_v14  ;;  %1165 = vmatpush.msra.mxu2 %v1092_v16  ;;  %v1106_v26 = vld [vmem:[%s2968_s2 + $0x1c8] sm:$0xff]  ;;  %v1057_v29 = vld [vmem:[%s2968_s2 + $0x40] sm:$0xff]  ;;  %v1088_v32 = vld [vmem:[%s2968_s2 + $0x138] sm:$0xff] }
  0x15   : > { %1141 = vmatpush.msra.mxu1 %v1077_v15  ;;  %1119 = vmatpush.msra.mxu0 %v1060_v17  ;;  %v1074_v27 = vld [vmem:[%s2968_s2 + $0xc8] sm:$0xff]  ;;  %v1105_v30 = vld [vmem:[%s2968_s2 + $0x1c0] sm:$0xff]  ;;  %v1056_v33 = vld [vmem:[%s2968_s2 + $0x38] sm:$0xff] }
  0x16   : > { %1188 = vmatpush.msra.mxu3 %v1108_v18  ;;  %1166 = vmatpush.msra.mxu2 %v1091_v20  ;;  %v1073_v31 = vld [vmem:[%s2968_s2 + $0xc0] sm:$0xff]  ;;  %v1104_v34 = vld [vmem:[%s2968_s2 + $0x1b8] sm:$0xff]  ;;  %v1087_v36 = vld [vmem:[%s2968_s2 + $0x130] sm:$0xff] }
  0x17   : > { %1142 = vmatpush.msra.mxu1 %v1076_v19  ;;  %1120 = vmatpush.msra.mxu0 %v1059_v21  ;;  %v1072_v35 = vld [vmem:[%s2968_s2 + $0xb8] sm:$0xff]  ;;  %v1055_v37 = vld [vmem:[%s2968_s2 + $0x30] sm:$0xff]  ;;  %v1086_v38 = vld [vmem:[%s2968_s2 + $0x128] sm:$0xff] }
  0x18   : > { %1189 = vmatpush.msra.mxu3 %v1107_v22  ;;  %1167 = vmatpush.msra.mxu2 %v1090_v24  ;;  %v1103_v39 = vld [vmem:[%s2968_s2 + $0x1b0] sm:$0xff]  ;;  %v1054_v40 = vld [vmem:[%s2968_s2 + $0x28] sm:$0xff]  ;;  %v1085_v42 = vld [vmem:[%s2968_s2 + $0x120] sm:$0xff] }
  0x19   : > { %1143 = vmatpush.msra.mxu1 %v1075_v23  ;;  %1121 = vmatpush.msra.mxu0 %v1058_v25  ;;  %v1071_v41 = vld [vmem:[%s2968_s2 + $0xb0] sm:$0xff]  ;;  %v1102_v43 = vld [vmem:[%s2968_s2 + $0x1a8] sm:$0xff]  ;;  %v1053_v44 = vld [vmem:[%s2968_s2 + $0x20] sm:$0xff] }
  0x1a   : > { %1190 = vmatpush.msra.mxu3 %v1106_v26  ;;  %1168 = vmatpush.msra.mxu2 %v1089_v28  ;;  %v1070_v45 = vld [vmem:[%s2968_s2 + $0xa8] sm:$0xff]  ;;  %v1101_v46 = vld [vmem:[%s2968_s2 + $0x1a0] sm:$0xff]  ;;  %v1084_v48 = vld [vmem:[%s2968_s2 + $0x118] sm:$0xff] }
  0x1b   : > { %1144 = vmatpush.msra.mxu1 %v1074_v27  ;;  %1122 = vmatpush.msra.mxu0 %v1057_v29  ;;  %v1069_v47 = vld [vmem:[%s2968_s2 + $0xa0] sm:$0xff]  ;;  %v1052_v49 = vld [vmem:[%s2968_s2 + $0x18] sm:$0xff]  ;;  %v2123_v50 = vld [vmem:[%s2967_s1 + $0x10] sm:$0x7f] }
  0x1c   : > { %1191 = vmatpush.msra.mxu3 %v1105_v30  ;;  %1169 = vmatpush.msra.mxu2 %v1088_v32  ;;  %v2126_v51 = vld [vmem:[%s2094_s7 + $0x10] sm:$0x7f]  ;;  %v2129_v52 = vld [vmem:[%s2094_s7 + $0x10] sm:$0x80]  ;;  %v310_v55 = vrot.slane %v2123_v50, 1  ;;  %v427_v57 = vrot.slane %v2123_v50, 2 }
  0x1d   : > { %1145 = vmatpush.msra.mxu1 %v1073_v31  ;;  %1123 = vmatpush.msra.mxu0 %v1056_v33  ;;  %v224_v53 = vmul.f32 %v2126_v51, %v2123_v50  ;;  %v2134_v54 = vld [vmem:[%s2094_s7 + $0x30] sm:$0x3f]  ;;  %v2138_v56 = vld [vmem:[%s2094_s7 + $0x30] sm:$0xc0]  ;;  %v1100_v59 = vld [vmem:[%s2968_s2 + $0x198] sm:$0xff]  ;;  %v544_v8 = vrot.slane %v2123_v50, 3 }
  0x1e   : > { %1192 = vmatpush.msra.mxu3 %v1104_v34  ;;  %1170 = vmatpush.msra.mxu2 %v1087_v36  ;;  %v1083_v58 = vld [vmem:[%s2968_s2 + $0x110] sm:$0xff]  ;;  %v1068_v62 = vld [vmem:[%s2968_s2 + $0x98] sm:$0xff]  ;;  %v318_v0 = vmul.f32 %v310_v55, %v2129_v52  ;;  %v322_v1 = vmul.f32 %v310_v55, %v2134_v54  ;;  %v435_v2 = vmul.f32 %v427_v57, %v2138_v56  ;;  %v661_v10 = vrot.slane %v2123_v50, 4  ;;  %v1082_v17 = vld [vmem:[%s2968_s2 + $0x108] sm:$0xff] }
  0x1f   : > { %1146 = vmatpush.msra.mxu1 %v1072_v35  ;;  %1124 = vmatpush.msra.mxu0 %v1055_v37  ;;  %v2148_v60 = vld [vmem:[%s2094_s7 + $0x50] sm:$0x1f]  ;;  %v2151_v61 = vld [vmem:[%s2094_s7 + $0x50] sm:$0xe0]  ;;  %v241_v63 = vsel %vm226_vm0, %v224_v53, 0.0  ;;  %v778_v16 = vrot.slane %v2123_v50, 5 }
  0x20   : > { %1193 = vmatpush.msra.mxu3 %v1103_v39  ;;  %1171 = vmatpush.msra.mxu2 %v1086_v38  ;;  %v2161_v3 = vld [vmem:[%s2094_s7 + $0x70] sm:$0xf]  ;;  %v2164_v4 = vld [vmem:[%s2094_s7 + $0x70] sm:$0xf0]  ;;  %v242_v6 = vrot.slane %v241_v63, 4  ;;  %v439_v7 = vmul.f32 %v427_v57, %v2148_v60  ;;  %v338_v13 = vrot.slane %v318_v0, 7  ;;  %v552_v22 = vmul.f32 %v544_v8, %v2151_v61 }
  0x21   : > { %1147 = vmatpush.msra.mxu1 %v1071_v41  ;;  %1125 = vmatpush.msra.mxu0 %v1054_v40  ;;  %v1051_v5 = vld [vmem:[%s2968_s2 + $0x10] sm:$0xff]  ;;  %v339_v14 = vrot.slane %v322_v1, 7  ;;  %v455_v15 = vrot.slane %v435_v2, 6  ;;  %v1050_v18 = vld [vmem:[%s2968_s2 + $0x8] sm:$0xff]  ;;  %v556_v23 = vmul.f32 %v544_v8, %v2161_v3  ;;  %v669_v25 = vmul.f32 %v661_v10, %v2164_v4  ;;  %v1081_v31 = vld [vmem:[%s2968_s2 + $0x100] sm:$0xff] }
  0x22   : > { %1194 = vmatpush.msra.mxu3 %v1102_v43  ;;  %1172 = vmatpush.msra.mxu2 %v1085_v42  ;;  %v2172_v9 = vld [vmem:[%s2094_s7 + $0x90] sm:$0x7]  ;;  %v1098_v19 = vld [vmem:[%s2968_s2 + $0x188] sm:$0xff]  ;;  %v243_v20 = vadd.f32 %v242_v6, %v241_v63  ;;  %v456_v21 = vrot.slane %v439_v7, 6  ;;  %v2197_v27 = vld [vmem:[%s2094_s7 + $0x90] sm:$0xf8] }
  0x23   : > { %1148 = vmatpush.msra.mxu1 %v1070_v45  ;;  %1126 = vmatpush.msra.mxu0 %v1053_v44  ;;  %v1099_v11 = vld [vmem:[%s2968_s2 + $0x190] sm:$0xff]  ;;  %v340_v24 = vsel %vm283_vm1, %v338_v13, %v339_v14  ;;  %v673_v26 = vmul.f32 %v661_v10, %v2172_v9  ;;  %v895_v29 = vrot.slane %v2123_v50, 6  ;;  %v1066_v30 = vld [vmem:[%s2968_s2 + $0x88] sm:$0xff]  ;;  %v572_v35 = vrot.slane %v552_v22, 5  ;;  %v1049_v41 = vld [vmem:[%s2968_s2] sm:$0xff] }
  0x24   : > { %1195 = vmatpush.msra.mxu3 %v1101_v46  ;;  %1173 = vmatpush.msra.mxu2 %v1084_v48  ;;  %v1067_v12 = vld [vmem:[%s2968_s2 + $0x90] sm:$0xff]  ;;  %v244_v32 = vrot.slane %v243_v20, 2  ;;  %v362_v33 = vsel %vm226_vm0, %v340_v24, 0.0  ;;  %v457_v34 = vsel %vm404_vm2, %v455_v15, %v456_v21  ;;  %v573_v39 = vrot.slane %v556_v23, 5  ;;  %v1097_v42 = vld [vmem:[%s2968_s2 + $0x180] sm:$0xff] }
  0x25   : > { %1149 = vmatpush.msra.mxu1 %v1069_v47  ;;  %1127 = vmatpush.msra.mxu0 %v1052_v49  ;;  %v2200_v28 = vld [vmem:[%s2094_s7 + $0xb0] sm:$0x3]  ;;  %v2212_v36 = vld [vmem:[%s2094_s7 + $0xb0] sm:$0xfc]  ;;  %v363_v37 = vrot.slane %v362_v33, 4  ;;  %v479_v38 = vsel %vm226_vm0, %v457_v34, 0.0  ;;  %v786_v46 = vmul.f32 %v778_v16, %v2197_v27 }
  0x26   : > { %1196 = vmatpush.msra.mxu3 %v1100_v59  ;;  %1174 = vmatpush.msra.mxu2 %v1083_v58  ;;  %v689_v40 = vrot.slane %v669_v25, 4  ;;  %v245_v43 = vadd.f32 %v244_v32, %v243_v20  ;;  %v480_v44 = vrot.slane %v479_v38, 4  ;;  %v690_v45 = vrot.slane %v673_v26, 4  ;;  %v2225_v50 = vld [vmem:[%s2094_s7 + $0xd0] sm:$0x1] }
  0x27   : > { %1150 = vmatpush.msra.mxu1 %v1068_v62  ;;  %1128 = vmatpush.msra.mxu0 %v1051_v5  ;;  %v364_v47 = vadd.f32 %v363_v37, %v362_v33  ;;  %v574_v48 = vsel %vm521_vm3, %v572_v35, %v573_v39  ;;  %v790_v49 = vmul.f32 %v778_v16, %v2200_v28  ;;  %v2233_v62 = vld [vmem:[%s2967_s1 + $0x26] ss:$8 sm:$0xf]  ;;  %v806_v2 = vrot.slane %v786_v46, 3 }
  0x28   : > { %1197 = vmatpush.msra.mxu3 %v1099_v11  ;;  %1175 = vmatpush.msra.mxu2 %v1082_v17  ;;  %v903_v53 = vmul.f32 %v895_v29, %v2212_v36  ;;  %v246_v55 = vrot.slane %v245_v43, 1  ;;  %v481_v57 = vadd.f32 %v480_v44, %v479_v38  ;;  %v596_v58 = vsel %vm226_vm0, %v574_v48, 0.0  ;;  %v2240_v14 = vld [vmem:[%s2967_s1 + $0x27] ss:$8 sm:$0xf] }
  0x29   : > { %1151 = vmatpush.msra.mxu1 %v1067_v12  ;;  %1129 = vmatpush.msra.mxu0 %v1050_v18  ;;  %v691_v59 = vsel %vm638_vm4, %v689_v40, %v690_v45  ;;  %v365_v63 = vrot.slane %v364_v47, 2  ;;  %v597_v0 = vrot.slane %v596_v58, 4  ;;  %v807_v8 = vrot.slane %v790_v49, 3  ;;  %v2261_v44 = vld [vmem:[%s2094_s7] sm:$0x80] }
  0x2a   : > { %1198 = vmatpush.msra.mxu3 %v1098_v19  ;;  %1176 = vmatpush.msra.mxu2 %v1081_v31  ;;  %v713_v1 = vsel %vm226_vm0, %v691_v59, 0.0  ;;  %v247_v5 = vadd.f32 %v246_v55, %v245_v43  ;;  %v482_v6 = vrot.slane %v481_v57, 2  ;;  %v907_v12 = vmul.f32 %v895_v29, %v2225_v50  ;;  %v2245_v19 = vld [vmem:[%s2094_s7] sm:$0x7f] }
  0x2b   : > { %1152 = vmatpush.msra.mxu1 %v1066_v30  ;;  %1130 = vmatpush.msra.mxu0 %v1049_v41  ;;  %v714_v7 = vrot.slane %v713_v1, 4  ;;  %v366_v10 = vadd.f32 %v365_v63, %v364_v47  ;;  %v598_v11 = vadd.f32 %v597_v0, %v596_v58  ;;  %v923_v13 = vrot.slane %v903_v53, 2  ;;  %v2252_v30 = vld [vmem:[%s2967_s1] sm:$0x7f] }
  0x2c   : > { %1199 = vmatpush.msra.mxu3 %v1097_v42  ;;  %v483_v15 = vadd.f32 %v482_v6, %v481_v57  ;;  %v808_v17 = vsel %vm755_vm5, %v806_v2, %v807_v8  ;;  %v996_v18 = vperm.slane %v2233_v62, 2  ;;  %v924_v23 = vrot.slane %v907_v12, 2  ;;  %v2265_v49 = vld [vmem:[%s2094_s7 + $0x20] sm:$0x3f]  ;;  %v2269_v58 = vld [vmem:[%s2094_s7 + $0x20] sm:$0xc0] }
  0x2d   : > { %v715_v16 = vadd.f32 %v714_v7, %v713_v1  ;;  %v367_v20 = vrot.slane %v366_v10, 1  ;;  %v599_v21 = vrot.slane %v598_v11, 2  ;;  %v830_v22 = vsel %vm226_vm0, %v808_v17, 0.0  ;;  %v2273_v2 = vld [vmem:[%s2094_s7 + $0x40] sm:$0x1f] }
  0x2e   : > { %v484_v24 = vrot.slane %v483_v15, 1  ;;  %v831_v26 = vrot.slane %v830_v22, 4  ;;  %v1009_v29 = vperm.slane %v2240_v14, 2  ;;  %v925_v33 = vsel %vm872_vm6, %v923_v13, %v924_v23  ;;  %v2285_v17 = vld [vmem:[%s2094_s7 + $0x60] sm:$0xf] }
  0x2f   : > { %v716_v25 = vrot.slane %v715_v16, 2  ;;  %v368_v31 = vadd.f32 %v367_v20, %v366_v10  ;;  %v600_v32 = vadd.f32 %v599_v21, %v598_v11  ;;  %v222_v34 = vmul.f32 %v2245_v19, %v2252_v30  ;;  %v2280_v11 = vld [vmem:[%s2094_s7 + $0x40] sm:$0xe0] }
  0x30   : > { %v485_v35 = vadd.f32 %v484_v24, %v483_v15  ;;  %v832_v38 = vadd.f32 %v831_v26, %v830_v22  ;;  %v947_v39 = vsel %vm226_vm0, %v925_v33, 0.0  ;;  %v308_v57 = vrot.slane %v2252_v30, 1 }
  0x31   : > { %v717_v37 = vadd.f32 %v716_v25, %v715_v16  ;;  %v601_v40 = vrot.slane %v600_v32, 1  ;;  %v948_v41 = vrot.slane %v947_v39, 4  ;;  %v971_v42 = vsel %vm283_vm1, %v247_v5, %v368_v31 }
  0x32   : > { %v227_v43 = vsel %vm226_vm0, %v222_v34, 0.0  ;;  %v833_v46 = vrot.slane %v832_v38, 2  ;;  %v975_v47 = vsel %vm404_vm2, %v971_v42, %v485_v35  ;;  %v425_v59 = vrot.slane %v2252_v30, 2 }
  0x33   : > { %v718_v45 = vrot.slane %v717_v37, 1  ;;  %v228_v48 = vrot.slane %v227_v43, 4  ;;  %v602_v53 = vadd.f32 %v601_v40, %v600_v32  ;;  %v949_v55 = vadd.f32 %v948_v41, %v947_v39 }
  0x34   : > { %v834_v0 = vadd.f32 %v833_v46, %v832_v38  ;;  %v542_v5 = vrot.slane %v2252_v30, 3  ;;  %v316_v8 = vmul.f32 %v308_v57, %v2261_v44  ;;  %v320_v10 = vmul.f32 %v308_v57, %v2265_v49  ;;  %v2295_v46 = vld [vmem:[%s2094_s7 + $0x60] sm:$0xf0] }
  0x35   : > { %v719_v63 = vadd.f32 %v718_v45, %v717_v37  ;;  %v229_v1 = vadd.f32 %v228_v48, %v227_v43  ;;  %v950_v6 = vrot.slane %v949_v55, 2  ;;  %v979_v7 = vsel %vm521_vm3, %v975_v47, %v602_v53  ;;  %v2298_v47 = vld [vmem:[%s2094_s7 + $0x80] sm:$0x7]  ;;  %v2303_v57 = vld [vmem:[%s2094_s7 + $0x80] sm:$0xf8] }
  0x36   : > { %v835_v12 = vrot.slane %v834_v0, 1  ;;  %v433_v16 = vmul.f32 %v425_v59, %v2269_v58  ;;  %v332_v21 = vrot.slane %v316_v8, 7  ;;  %v333_v22 = vrot.slane %v320_v10, 7 }
  0x37   : > { %v983_v13 = vsel %vm638_vm4, %v979_v7, %v719_v63  ;;  %v230_v15 = vrot.slane %v229_v1, 2  ;;  %v951_v20 = vadd.f32 %v950_v6, %v949_v55  ;;  %v437_v23 = vmul.f32 %v425_v59, %v2273_v2  ;;  %v2309_v6 = vld [vmem:[%s2094_s7 + $0xa0] sm:$0x3] }
  0x38   : > { %v836_v24 = vadd.f32 %v835_v12, %v834_v0  ;;  %v449_v26 = vrot.slane %v433_v16, 6  ;;  %v550_v31 = vmul.f32 %v542_v5, %v2280_v11  ;;  %v334_v33 = vsel %vm283_vm1, %v332_v21, %v333_v22 }
  0x39   : > { %v231_v25 = vadd.f32 %v230_v15, %v229_v1  ;;  %v952_v32 = vrot.slane %v951_v20, 1  ;;  %v450_v34 = vrot.slane %v437_v23, 6  ;;  %v554_v35 = vmul.f32 %v542_v5, %v2285_v17 }
  0x3a   : > { %v987_v37 = vsel %vm755_vm5, %v983_v13, %v836_v24  ;;  %v348_v39 = vsel %vm226_vm0, %v334_v33, 0.0  ;;  %v566_v40 = vrot.slane %v550_v31, 5  ;;  %v659_v55 = vrot.slane %v2252_v30, 4  ;;  %v2324_v33 = vld [vmem:[%s2094_s7 + $0xc0] sm:$0x1] }
  0x3b   : > { %v232_v38 = vrot.slane %v231_v25, 1  ;;  %v953_v41 = vadd.f32 %v952_v32, %v951_v20  ;;  %v349_v42 = vrot.slane %v348_v39, 4  ;;  %v451_v43 = vsel %vm404_vm2, %v449_v26, %v450_v34  ;;  %v2321_v32 = vld [vmem:[%s2094_s7 + $0xa0] sm:$0xfc] }
  0x3c   : > { %v567_v45 = vrot.slane %v554_v35, 5  ;;  %v465_v53 = vsel %vm226_vm0, %v451_v43, 0.0  ;;  %v776_v59 = vrot.slane %v2252_v30, 5  ;;  %v667_v10 = vmul.f32 %v659_v55, %v2295_v46 }
  0x3d   : > { %v233_v48 = vadd.f32 %v232_v38, %v231_v25  ;;  %v991_v63 = vsel %vm872_vm6, %v987_v37, %v953_v41  ;;  %v350_v0 = vadd.f32 %v349_v42, %v348_v39  ;;  %v466_v1 = vrot.slane %v465_v53, 4 }
  0x3e   : > { %v568_v5 = vsel %vm521_vm3, %v566_v40, %v567_v45  ;;  %v1004_v7 = vmul.f32 %v996_v18, %v991_v63  ;;  %v671_v12 = vmul.f32 %v659_v55, %v2298_v47  ;;  %v784_v20 = vmul.f32 %v776_v59, %v2303_v57 }
  0x3f   : > { %v582_v8 = vsel %vm226_vm0, %v568_v5, 0.0  ;;  %v351_v13 = vrot.slane %v350_v0, 2  ;;  %v467_v15 = vadd.f32 %v466_v1, %v465_v53  ;;  %v683_v22 = vrot.slane %v667_v10, 4  ;;  %v2341_v10 = vld [vmem:[%s2967_s1 + $0x18] sm:$0x7f] }
  0x40   : > { %v583_v16 = vrot.slane %v582_v8, 4  ;;  %v1017_v21 = vadd.f32 %v1009_v29, %v1004_v7  ;;  %v684_v23 = vrot.slane %v671_v12, 4  ;;  %v788_v18 = vmul.f32 %v776_v59, %v2309_v6 }
  0x41   : > { %v352_v24 = vadd.f32 %v351_v13, %v350_v0  ;;  %v468_v25 = vrot.slane %v467_v15, 2  ;;  %v800_v31 = vrot.slane %v784_v20, 3  ;;  %v893_v29 = vrot.slane %v2252_v30, 6  ;;  %v2336_v0 = vld [vmem:[%s2094_s7 + $0x18] sm:$0x7f] }
  0x42   : > { %v584_v26 = vadd.f32 %v583_v16, %v582_v8  ;;  %1837 = vmatmul.msk.f32.vlgmr.msra.gmra.mxu2 %vm226_vm0, %v1017_v21  ;;  %v685_v34 = vsel %vm638_vm4, %v683_v22, %v684_v23  ;;  %v801_v35 = vrot.slane %v788_v18, 3  ;;  %v994_v37 = vperm.slane %v2233_v62, 0  ;;  %v2349_v18 = vld [vmem:[%s2094_s7 + $0x18] sm:$0x80] }
  0x43   : > { %v353_v38 = vrot.slane %v352_v24, 1  ;;  %v469_v39 = vadd.f32 %v468_v25, %v467_v15  ;;  %v699_v41 = vsel %vm226_vm0, %v685_v34, 0.0  ;;  %v901_v45 = vmul.f32 %v893_v29, %v2321_v32 }
  0x44   : > { %v585_v40 = vrot.slane %v584_v26, 2  ;;  %v700_v42 = vrot.slane %v699_v41, 4  ;;  %v802_v43 = vsel %vm755_vm5, %v800_v31, %v801_v35  ;;  %v905_v53 = vmul.f32 %v893_v29, %v2324_v33 }
  0x45   : > { %v354_v55 = vadd.f32 %v353_v38, %v352_v24  ;;  %v470_v59 = vrot.slane %v469_v39, 1  ;;  %v816_v30 = vsel %vm226_vm0, %v802_v43, 0.0  ;;  %v917_v7 = vrot.slane %v901_v45, 2  ;;  %v2352_v24 = vld [vmem:[%s2094_s7 + $0x38] sm:$0x3f] }
  0x46   : > { %v586_v63 = vadd.f32 %v585_v40, %v584_v26  ;;  %v701_v1 = vadd.f32 %v700_v42, %v699_v41  ;;  %v817_v5 = vrot.slane %v816_v30, 4  ;;  %v918_v8 = vrot.slane %v905_v53, 2  ;;  %v2362_v43 = vld [vmem:[%s2094_s7 + $0x38] sm:$0xc0] }
  0x47   : > { %v471_v12 = vadd.f32 %v470_v59, %v469_v39  ;;  %v969_v15 = vsel %vm283_vm1, %v233_v48, %v354_v55  ;;  %v225_v23 = vmul.f32 %v2336_v0, %v2341_v10  ;;  %v311_v31 = vrot.slane %v2341_v10, 1  ;;  %v2365_v59 = vld [vmem:[%s2094_s7 + $0x58] sm:$0x1f] }
  0x48   : > { %v587_v13 = vrot.slane %v586_v63, 1  ;;  %v702_v20 = vrot.slane %v701_v1, 2  ;;  %v818_v21 = vadd.f32 %v817_v5, %v816_v30  ;;  %v919_v22 = vsel %vm872_vm6, %v917_v7, %v918_v8  ;;  %v2369_v30 = vld [vmem:[%s2094_s7 + $0x58] sm:$0xe0] }
  0x49   : > { %v933_v26 = vsel %vm226_vm0, %v919_v22, 0.0  ;;  %v973_v48 = vsel %vm404_vm2, %v969_v15, %v471_v12  ;;  %v248_v38 = vsel %vm226_vm0, %v225_v23, 0.0  ;;  %v319_v41 = vmul.f32 %v311_v31, %v2349_v18 }
  0x4a   : > { %v588_v25 = vadd.f32 %v587_v13, %v586_v63  ;;  %v703_v34 = vadd.f32 %v702_v20, %v701_v1  ;;  %v819_v35 = vrot.slane %v818_v21, 2  ;;  %v934_v29 = vrot.slane %v933_v26, 4 }
  0x4b   : > { %v249_v40 = vrot.slane %v248_v38, 4  ;;  %v323_v42 = vmul.f32 %v311_v31, %v2352_v24  ;;  %v428_v63 = vrot.slane %v2341_v10, 2  ;;  %v341_v5 = vrot.slane %v319_v41, 7 }
  0x4c   : > { %v977_v39 = vsel %vm521_vm3, %v973_v48, %v588_v25  ;;  %v704_v45 = vrot.slane %v703_v34, 1  ;;  %v820_v53 = vadd.f32 %v819_v35, %v818_v21  ;;  %v935_v55 = vadd.f32 %v934_v29, %v933_v26  ;;  %v2376_v25 = vld [vmem:[%s2094_s7 + $0x78] sm:$0xf] }
  0x4d   : > { %v250_v1 = vadd.f32 %v249_v40, %v248_v38  ;;  %v342_v7 = vrot.slane %v323_v42, 7  ;;  %v545_v8 = vrot.slane %v2341_v10, 3  ;;  %v436_v20 = vmul.f32 %v428_v63, %v2362_v43  ;;  %2989 = vst [vmem:[#allocation2_spill] sm:$0xff] %v2376_v25 }
  0x4e   : > { %v705_v12 = vadd.f32 %v704_v45, %v703_v34  ;;  %v821_v13 = vrot.slane %v820_v53, 1  ;;  %v936_v15 = vrot.slane %v935_v55, 2  ;;  %v440_v23 = vmul.f32 %v428_v63, %v2365_v59 }
  0x4f   : > { %v251_v22 = vrot.slane %v250_v1, 2  ;;  %v343_v21 = vsel %vm283_vm1, %v341_v5, %v342_v7  ;;  %v553_v26 = vmul.f32 %v545_v8, %v2369_v30  ;;  %v458_v40 = vrot.slane %v436_v20, 6  ;;  %v2384_v7 = vld [vmem:[%s2094_s7 + $0x78] sm:$0xf0] }
  0x50   : > { %v822_v48 = vadd.f32 %v821_v13, %v820_v53  ;;  %v937_v31 = vadd.f32 %v936_v15, %v935_v55  ;;  %v981_v35 = vsel %vm638_vm4, %v977_v39, %v705_v12  ;;  %v369_v34 = vsel %vm226_vm0, %v343_v21, 0.0  ;;  %2990 = vst [vmem:[#allocation3_spill] sm:$0xff] %v2384_v7  ;;  %v2388_v12 = vld [vmem:[%s2094_s7 + $0x98] sm:$0x7]  ;;  %v2392_v13 = vld [vmem:[%s2094_s7 + $0x98] sm:$0xf8] }
  0x51   : > { %v252_v29 = vadd.f32 %v251_v22, %v250_v1  ;;  %v370_v38 = vrot.slane %v369_v34, 4  ;;  %v459_v41 = vrot.slane %v440_v23, 6  ;;  %v557_v63 = vmul.f32 %v545_v8, %v2376_v25  ;;  %2991 = vst [vmem:[#allocation4_spill] sm:$0xff] %v2388_v12  ;;  %v1065_v21 = vld [vmem:[%s2968_s2 + $0x80] sm:$0xff] }
  0x52   : > { %v938_v42 = vrot.slane %v937_v31, 1  ;;  %v985_v45 = vsel %vm755_vm5, %v981_v35, %v822_v48  ;;  %v575_v5 = vrot.slane %v553_v26, 5  ;;  %v662_v1 = vrot.slane %v2341_v10, 4  ;;  %2992 = vst [vmem:[#allocation5_spill] sm:$0xff] %v2392_v13  ;;  %1153 = vmatpush.msra.mxu1 %v1065_v21 }
  0x53   : > { %v253_v53 = vrot.slane %v252_v29, 1  ;;  %v371_v55 = vadd.f32 %v370_v38, %v369_v34  ;;  %v460_v39 = vsel %vm404_vm2, %v458_v40, %v459_v41  ;;  %v576_v22 = vrot.slane %v557_v63, 5  ;;  %v2401_v34 = vld [vmem:[%s2094_s7 + $0xb8] sm:$0x3] }
  0x54   : > { %v939_v15 = vadd.f32 %v938_v42, %v937_v31  ;;  %v486_v20 = vsel %vm226_vm0, %v460_v39, 0.0  ;;  %v779_v8 = vrot.slane %v2341_v10, 5  ;;  %v670_v35 = vmul.f32 %v662_v1, %v2384_v7  ;;  %2993 = vst [vmem:[#allocation6_spill] sm:$0xff] %v2401_v34 }
  0x55   : > { %v254_v23 = vadd.f32 %v253_v53, %v252_v29  ;;  %v372_v26 = vrot.slane %v371_v55, 2  ;;  %v487_v48 = vrot.slane %v486_v20, 4  ;;  %v577_v31 = vsel %vm521_vm3, %v575_v5, %v576_v22 }
  0x56   : > { %v989_v38 = vsel %vm872_vm6, %v985_v45, %v939_v15  ;;  %v674_v40 = vmul.f32 %v662_v1, %v2388_v12  ;;  %v787_v41 = vmul.f32 %v779_v8, %v2392_v13  ;;  %v603_v53 = vsel %vm226_vm0, %v577_v31, 0.0  ;;  %v2414_v13 = vld [vmem:[%s2094_s7 + $0xb8] sm:$0xfc]  ;;  %v2444_v31 = vld [vmem:[%s2094_s7 + $0x28] sm:$0x3f] }
  0x57   : > { %v1002_v42 = vmul.f32 %v994_v37, %v989_v38  ;;  %v373_v29 = vadd.f32 %v372_v26, %v371_v55  ;;  %v488_v63 = vadd.f32 %v487_v48, %v486_v20  ;;  %v604_v39 = vrot.slane %v603_v53, 4  ;;  %2995 = vst [vmem:[#allocation7_spill] sm:$0xff] %v2414_v13  ;;  %v2418_v26 = vld [vmem:[%s2094_s7 + $0xd8] sm:$0x1] }
  0x58   : > { %v692_v16 = vrot.slane %v670_v35, 4  ;;  %v693_v21 = vrot.slane %v674_v40, 4  ;;  %v791_v45 = vmul.f32 %v779_v8, %v2401_v34  ;;  %v2994_v15 = vperm.slane %v2240_v14, 0  ;;  %2996 = vst [vmem:[#allocation8_spill] sm:$0xff] %v2418_v26 }
  0x59   : > { %v374_v22 = vrot.slane %v373_v29, 1  ;;  %v489_v1 = vrot.slane %v488_v63, 2  ;;  %v809_v12 = vrot.slane %v787_v41, 3  ;;  %v605_v37 = vadd.f32 %v604_v39, %v603_v53  ;;  %v2427_v53 = vld [vmem:[%s2094_s7 + $0x8] sm:$0x7f]  ;;  %2999 = vst [vmem:[#allocation11_spill] sm:$0xff] %v2444_v31 }
  0x5a   : > { %v1015_v5 = vadd.f32 %v2994_v15, %v1002_v42  ;;  %v694_v55 = vsel %vm638_vm4, %v692_v16, %v693_v21  ;;  %v810_v20 = vrot.slane %v791_v45, 3  ;;  %v896_v48 = vrot.slane %v2341_v10, 6  ;;  %2997 = vst [vmem:[#allocation9_spill] sm:$0xff] %v2427_v53  ;;  %v2435_v21 = vld [vmem:[%s2967_s1 + $0x8] sm:$0x7f] }
  0x5b   : > { %v375_v8 = vadd.f32 %v374_v22, %v373_v29  ;;  %v490_v35 = vadd.f32 %v489_v1, %v488_v63  ;;  %v720_v38 = vsel %vm226_vm0, %v694_v55, 0.0  ;;  %v606_v40 = vrot.slane %v605_v37, 2 }
  0x5c   : > { %1835 = vmatmul.msk.f32.vlgmr.msra.gmra.mxu0 %vm226_vm0, %v1015_v5  ;;  %v721_v41 = vrot.slane %v720_v38, 4  ;;  %v811_v42 = vsel %vm755_vm5, %v809_v12, %v810_v20  ;;  %v904_v16 = vmul.f32 %v896_v48, %v2414_v13  ;;  %v908_v29 = vmul.f32 %v896_v48, %v2418_v26  ;;  %v2441_v48 = vld [vmem:[%s2094_s7 + $0x8] sm:$0x80] }
  0x5d   : > { %v491_v39 = vrot.slane %v490_v35, 1  ;;  %v837_v10 = vsel %vm226_vm0, %v811_v42, 0.0  ;;  %v972_v63 = vsel %vm283_vm1, %v254_v23, %v375_v8  ;;  %v607_v45 = vadd.f32 %v606_v40, %v605_v37  ;;  %2998 = vst [vmem:[#allocation10_spill] sm:$0xff] %v2441_v48 }
  0x5e   : > { %v722_v12 = vadd.f32 %v721_v41, %v720_v38  ;;  %v838_v15 = vrot.slane %v837_v10, 4  ;;  %v926_v5 = vrot.slane %v904_v16, 2  ;;  %v927_v1 = vrot.slane %v908_v29, 2  ;;  %v2451_v41 = vld [vmem:[%s2094_s7 + $0x28] sm:$0xc0] }
  0x5f   : > { %v492_v22 = vadd.f32 %v491_v39, %v490_v35  ;;  %v223_v20 = vmul.f32 %v2427_v53, %v2435_v21  ;;  %v608_v23 = vrot.slane %v607_v45, 1  ;;  %v309_v37 = vrot.slane %v2435_v21, 1 }
  0x60   : > { %v723_v8 = vrot.slane %v722_v12, 2  ;;  %v839_v42 = vadd.f32 %v838_v15, %v837_v10  ;;  %v928_v38 = vsel %vm872_vm6, %v926_v5, %v927_v1  ;;  %v426_v16 = vrot.slane %v2435_v21, 2  ;;  %v2458_v1 = vld [vmem:[%s2094_s7 + $0x48] sm:$0x1f] }
  0x61   : > { %v976_v35 = vsel %vm404_vm2, %v972_v63, %v492_v22  ;;  %v234_v40 = vsel %vm226_vm0, %v223_v20, 0.0  ;;  %v609_v39 = vadd.f32 %v608_v23, %v607_v45  ;;  %v954_v10 = vsel %vm226_vm0, %v928_v38, 0.0  ;;  %3000 = vst [vmem:[#allocation12_spill] sm:$0xff] %v2458_v1 }
  0x62   : > { %v724_v29 = vadd.f32 %v723_v8, %v722_v12  ;;  %v840_v55 = vrot.slane %v839_v42, 2  ;;  %v955_v15 = vrot.slane %v954_v10, 4  ;;  %v235_v53 = vrot.slane %v234_v40, 4 }
  0x63   : > { %v317_v26 = vmul.f32 %v309_v37, %v2441_v48  ;;  %v321_v5 = vmul.f32 %v309_v37, %v2444_v31  ;;  %v980_v20 = vsel %vm521_vm3, %v976_v35, %v609_v39  ;;  %v434_v45 = vmul.f32 %v426_v16, %v2451_v41  ;;  %v2464_v37 = vld [vmem:[%s2094_s7 + $0x48] sm:$0xe0] }
  0x64   : > { %v725_v63 = vrot.slane %v724_v29, 1  ;;  %v841_v22 = vadd.f32 %v840_v55, %v839_v42  ;;  %v956_v12 = vadd.f32 %v955_v15, %v954_v10  ;;  %v236_v23 = vadd.f32 %v235_v53, %v234_v40  ;;  %3001 = vst [vmem:[#allocation13_spill] sm:$0xff] %v2464_v37  ;;  %v2468_v42 = vld [vmem:[%s2094_s7 + $0x68] sm:$0xf] }
  0x65   : > { %v335_v8 = vrot.slane %v317_v26, 7  ;;  %v336_v38 = vrot.slane %v321_v5, 7  ;;  %v438_v7 = vmul.f32 %v426_v16, %v2458_v1  ;;  %v452_v48 = vrot.slane %v434_v45, 6  ;;  %3002 = vst [vmem:[#allocation14_spill] sm:$0xff] %v2468_v42  ;;  %v2475_v5 = vld [vmem:[%s2094_s7 + $0x68] sm:$0xf0] }
  0x66   : > { %v726_v13 = vadd.f32 %v725_v63, %v724_v29  ;;  %v842_v34 = vrot.slane %v841_v22, 1  ;;  %v957_v31 = vrot.slane %v956_v12, 2  ;;  %v237_v25 = vrot.slane %v236_v23, 2  ;;  %3003 = vst [vmem:[#allocation15_spill] sm:$0xff] %v2475_v5 }
  0x67   : > { %v337_v55 = vsel %vm283_vm1, %v335_v8, %v336_v38  ;;  %v543_v35 = vrot.slane %v2435_v21, 3  ;;  %v453_v39 = vrot.slane %v438_v7, 6 }
  0x68   : > { %v843_v53 = vadd.f32 %v842_v34, %v841_v22  ;;  %v984_v26 = vsel %vm638_vm4, %v980_v20, %v726_v13  ;;  %v355_v40 = vsel %vm226_vm0, %v337_v55, 0.0  ;;  %v958_v16 = vadd.f32 %v957_v31, %v956_v12  ;;  %v2481_v34 = vld [vmem:[%s2094_s7 + $0x88] sm:$0x7] }
  0x69   : > { %v238_v29 = vadd.f32 %v237_v25, %v236_v23  ;;  %v356_v10 = vrot.slane %v355_v40, 4  ;;  %v551_v15 = vmul.f32 %v543_v35, %v2464_v37  ;;  %v454_v45 = vsel %vm404_vm2, %v452_v48, %v453_v39  ;;  %3004 = vst [vmem:[#allocation16_spill] sm:$0xff] %v2481_v34 }
  0x6a   : > { %v988_v63 = vsel %vm755_vm5, %v984_v26, %v843_v53  ;;  %v555_v8 = vmul.f32 %v543_v35, %v2468_v42  ;;  %v660_v13 = vrot.slane %v2435_v21, 4  ;;  %v959_v22 = vrot.slane %v958_v16, 1  ;;  %v2488_v26 = vld [vmem:[%s2094_s7 + $0x88] sm:$0xf8] }
  0x6b   : > { %v239_v7 = vrot.slane %v238_v29, 1  ;;  %v357_v25 = vadd.f32 %v356_v10, %v355_v40  ;;  %v472_v31 = vsel %vm226_vm0, %v454_v45, 0.0  ;;  %v569_v12 = vrot.slane %v551_v15, 5  ;;  %3005 = vst [vmem:[#allocation17_spill] sm:$0xff] %v2488_v26  ;;  %v2492_v10 = vld [vmem:[%s2094_s7 + $0xa8] sm:$0x3] }
  0x6c   : > { %v473_v20 = vrot.slane %v472_v31, 4  ;;  %v570_v23 = vrot.slane %v555_v8, 5  ;;  %v668_v38 = vmul.f32 %v660_v13, %v2475_v5  ;;  %v960_v55 = vadd.f32 %v959_v22, %v958_v16  ;;  %3006 = vst [vmem:[#allocation18_spill] sm:$0xff] %v2492_v10  ;;  %v2506_v5 = vld [vmem:[%s2094_s7 + $0xc8] sm:$0x1] }
  0x6d   : > { %v240_v48 = vadd.f32 %v239_v7, %v238_v29  ;;  %v358_v53 = vrot.slane %v357_v25, 2  ;;  %v672_v35 = vmul.f32 %v660_v13, %v2481_v34  ;;  %v777_v15 = vrot.slane %v2435_v21, 5  ;;  %v2503_v34 = vld [vmem:[%s2094_s7 + $0xa8] sm:$0xfc] }
  0x6e   : > { %v474_v39 = vadd.f32 %v473_v20, %v472_v31  ;;  %v571_v42 = vsel %vm521_vm3, %v569_v12, %v570_v23  ;;  %v686_v40 = vrot.slane %v668_v38, 4  ;;  %v992_v45 = vsel %vm872_vm6, %v988_v63, %v960_v55 }
  0x6f   : > { %v359_v8 = vadd.f32 %v358_v53, %v357_v25  ;;  %v589_v16 = vsel %vm226_vm0, %v571_v42, 0.0  ;;  %v687_v29 = vrot.slane %v672_v35, 4  ;;  %v3007_v13 = vperm.slane %v2233_v62, 3 }
  0x70   : > { %v475_v7 = vrot.slane %v474_v39, 2  ;;  %v590_v31 = vrot.slane %v589_v16, 4  ;;  %v785_v20 = vmul.f32 %v777_v15, %v2488_v26  ;;  %v789_v38 = vmul.f32 %v777_v15, %v2492_v10 }
  0x71   : > { %v1005_v22 = vmul.f32 %v3007_v13, %v992_v45  ;;  %v360_v12 = vrot.slane %v359_v8, 1  ;;  %v688_v23 = vsel %vm638_vm4, %v686_v40, %v687_v29  ;;  %v894_v63 = vrot.slane %v2435_v21, 6 }
  0x72   : > { %v3008_v42 = vperm.slane %v2240_v14, 3  ;;  %v476_v55 = vadd.f32 %v475_v7, %v474_v39  ;;  %v591_v53 = vadd.f32 %v590_v31, %v589_v16  ;;  %v706_v35 = vsel %vm226_vm0, %v688_v23, 0.0 }
  0x73   : > { %v361_v45 = vadd.f32 %v360_v12, %v359_v8  ;;  %v707_v13 = vrot.slane %v706_v35, 4  ;;  %v803_v26 = vrot.slane %v785_v20, 3  ;;  %v804_v37 = vrot.slane %v789_v38, 3  ;;  %v204_v8 = vld [vmem:[%s2967_s1 + $0x10] sm:$0x80] }
  0x74   : > { %v1018_v25 = vadd.f32 %v3008_v42, %v1005_v22  ;;  %v477_v40 = vrot.slane %v476_v55, 1  ;;  %v592_v15 = vrot.slane %v591_v53, 2  ;;  %v902_v29 = vmul.f32 %v894_v63, %v2503_v34  ;;  %v2524_v22 = vld [vmem:[%s2967_s1 + $0x30] sm:$0x3f] }
  0x75   : > { %v906_v10 = vmul.f32 %v894_v63, %v2506_v5  ;;  %v708_v21 = vadd.f32 %v707_v13, %v706_v35  ;;  %v805_v1 = vsel %vm755_vm5, %v803_v26, %v804_v37  ;;  %v970_v39 = vsel %vm283_vm1, %v240_v48, %v361_v45 }
  0x76   : > { %1838 = vmatmul.msk.f32.vlgmr.msra.gmra.mxu3 %vm226_vm0, %v1018_v25  ;;  %v995_v16 = vperm.slane %v2233_v62, 1  ;;  %v478_v7 = vadd.f32 %v477_v40, %v476_v55  ;;  %v593_v31 = vadd.f32 %v592_v15, %v591_v53  ;;  %v823_v20 = vsel %vm226_vm0, %v805_v1, 0.0 }
  0x77   : > { %v920_v12 = vrot.slane %v902_v29, 2  ;;  %v709_v23 = vrot.slane %v708_v21, 2  ;;  %v824_v37 = vrot.slane %v823_v20, 4  ;;  %v921_v26 = vrot.slane %v906_v10, 2 }
  0x78   : > { %v594_v38 = vrot.slane %v593_v31, 1  ;;  %v974_v63 = vsel %vm404_vm2, %v970_v39, %v478_v7  ;;  %v216_v42 = vperm.slane %v204_v8, 7  ;;  %v265_v25 = vperm.slane %v2524_v22, 0 }
  0x79   : > { %v710_v35 = vadd.f32 %v709_v23, %v708_v21  ;;  %v825_v45 = vadd.f32 %v824_v37, %v823_v20  ;;  %v922_v13 = vsel %vm872_vm6, %v920_v12, %v921_v26  ;;  %v386_v55 = vperm.slane %v2524_v22, 1 }
  0x7a   : > { %v595_v53 = vadd.f32 %v594_v38, %v593_v31  ;;  %v940_v1 = vsel %vm226_vm0, %v922_v13, 0.0  ;;  %v220_v40 = vmul.f32 %v216_v42, %v2126_v51  ;;  %v269_v10 = vmul.f32 %v265_v25, %v2129_v52 }
  0x7b   : > { %v711_v15 = vrot.slane %v710_v35, 1  ;;  %v826_v29 = vrot.slane %v825_v45, 2  ;;  %v941_v48 = vrot.slane %v940_v1, 4  ;;  %v273_v39 = vmul.f32 %v265_v25, %v2134_v54 }
  0x7c   : > { %v978_v8 = vsel %vm521_vm3, %v974_v63, %v595_v53  ;;  %v290_v21 = vrot.slane %v269_v10, 7  ;;  %v390_v7 = vmul.f32 %v386_v55, %v2138_v56  ;;  %v394_v20 = vmul.f32 %v386_v55, %v2148_v60 }
  0x7d   : > { %v712_v12 = vadd.f32 %v711_v15, %v710_v35  ;;  %v827_v31 = vadd.f32 %v826_v29, %v825_v45  ;;  %v942_v23 = vadd.f32 %v941_v48, %v940_v1  ;;  %v291_v37 = vrot.slane %v273_v39, 7 }
  0x7e   : > { %v411_v26 = vrot.slane %v390_v7, 6  ;;  %v412_v51 = vrot.slane %v394_v20, 6  ;;  %v503_v52 = vperm.slane %v2524_v22, 2  ;;  %v620_v38 = vperm.slane %v2524_v22, 3 }
  0x7f   : > { %v828_v42 = vrot.slane %v827_v31, 1  ;;  %v943_v13 = vrot.slane %v942_v23, 2  ;;  %v982_v54 = vsel %vm638_vm4, %v978_v8, %v712_v12  ;;  %v292_v63 = vsel %vm283_vm1, %v290_v21, %v291_v37  ;;  %v2562_v20 = vld [vmem:[%s2967_s1 + $0x41] ss:$8 sm:$0xf] }
  0x80   : > { %v302_v25 = vadd.f32 %v292_v63, %v220_v40  ;;  %v413_v56 = vsel %vm404_vm2, %v411_v26, %v412_v51  ;;  %v507_v60 = vmul.f32 %v503_v52, %v2151_v61  ;;  %v511_v48 = vmul.f32 %v503_v52, %v2161_v3  ;;  %v2552_v40 = vld [vmem:[%s2967_s1 + $0x40] ss:$8 sm:$0xf]  ;;  %v202_v12 = vld [vmem:[%s2967_s1] sm:$0x80] }
  0x81   : > { %v829_v35 = vadd.f32 %v828_v42, %v827_v31  ;;  %v944_v45 = vadd.f32 %v943_v13, %v942_v23  ;;  %v624_v55 = vmul.f32 %v620_v38, %v2164_v4  ;;  %v628_v53 = vmul.f32 %v620_v38, %v2172_v9  ;;  %v206_v52 = vld [vmem:[%s2967_s1 + $0x20] sm:$0x3f] }
  0x82   : > { %v423_v1 = vadd.f32 %v413_v56, %v302_v25  ;;  %v528_v10 = vrot.slane %v507_v60, 5  ;;  %v529_v15 = vrot.slane %v511_v48, 5  ;;  %v737_v29 = vperm.slane %v2524_v22, 4 }
  0x83   : > { %v945_v39 = vrot.slane %v944_v45, 1  ;;  %v986_v61 = vsel %vm755_vm5, %v982_v54, %v829_v35  ;;  %v645_v3 = vrot.slane %v624_v55, 4  ;;  %v646_v8 = vrot.slane %v628_v53, 4 }
  0x84   : > { %v530_v21 = vsel %vm521_vm3, %v528_v10, %v529_v15  ;;  %v741_v4 = vmul.f32 %v737_v29, %v2197_v27  ;;  %v745_v9 = vmul.f32 %v737_v29, %v2200_v28  ;;  %v854_v7 = vperm.slane %v2524_v22, 5 }
  0x85   : > { %v946_v31 = vadd.f32 %v945_v39, %v944_v45  ;;  %v540_v23 = vadd.f32 %v530_v21, %v423_v1  ;;  %v647_v37 = vsel %vm638_vm4, %v645_v3, %v646_v8  ;;  %v1022_v26 = vperm.slane %v2552_v40, 2 }
  0x86   : > { %v762_v27 = vrot.slane %v741_v4, 3  ;;  %v763_v51 = vrot.slane %v745_v9, 3  ;;  %v858_v28 = vmul.f32 %v854_v7, %v2212_v36  ;;  %v862_v22 = vmul.f32 %v854_v7, %v2225_v50 }
  0x87   : > { %v990_v38 = vsel %vm872_vm6, %v986_v61, %v946_v31  ;;  %v657_v42 = vadd.f32 %v647_v37, %v540_v23  ;;  %v1035_v13 = vperm.slane %v2562_v20, 2  ;;  %v214_v54 = vperm.slane %v202_v12, 7 }
  0x88   : > { %v1003_v63 = vmul.f32 %v995_v16, %v990_v38  ;;  %v764_v25 = vsel %vm755_vm5, %v762_v27, %v763_v51  ;;  %v879_v56 = vrot.slane %v858_v28, 2  ;;  %v880_v60 = vrot.slane %v862_v22, 2  ;;  %v209_v28 = vld [vmem:[%s2967_s1 + $0x38] sm:$0x3f] }
  0x89   : > { %v774_v36 = vadd.f32 %v764_v25, %v657_v42  ;;  %v218_v50 = vmul.f32 %v214_v54, %v2245_v19  ;;  %v263_v48 = vperm.slane %v206_v52, 0  ;;  %v384_v35 = vperm.slane %v206_v52, 1 }
  0x8a   : > { %v3009_v45 = vperm.slane %v2240_v14, 1  ;;  %v881_v53 = vsel %vm872_vm6, %v879_v56, %v880_v60  ;;  %v501_v1 = vperm.slane %v206_v52, 2  ;;  %v618_v10 = vperm.slane %v206_v52, 3 }
  0x8b   : > { %v891_v15 = vadd.f32 %v881_v53, %v774_v36  ;;  %v267_v62 = vmul.f32 %v263_v48, %v2261_v44  ;;  %v271_v16 = vmul.f32 %v263_v48, %v2265_v49  ;;  %v388_v29 = vmul.f32 %v384_v35, %v2269_v58 }
  0x8c   : > { %v1016_v55 = vadd.f32 %v3009_v45, %v1003_v63  ;;  %v392_v19 = vmul.f32 %v384_v35, %v2273_v2  ;;  %v505_v39 = vmul.f32 %v501_v1, %v2280_v11  ;;  %v509_v14 = vmul.f32 %v501_v1, %v2285_v17  ;;  %v205_v11 = vld [vmem:[%s2967_s1 + $0x18] sm:$0x80] }
  0x8d   : > { %v622_v61 = vmul.f32 %v618_v10, %v2295_v46  ;;  %v1030_v3 = vmul.f32 %v1022_v26, %v891_v15  ;;  %v284_v8 = vrot.slane %v267_v62, 7  ;;  %v285_v21 = vrot.slane %v271_v16, 7 }
  0x8e   : > { %1836 = vmatmul.msk.f32.vlgmr.msra.gmra.mxu1 %vm226_vm0, %v1016_v55  ;;  %v405_v4 = vrot.slane %v388_v29, 6  ;;  %v406_v9 = vrot.slane %v392_v19, 6  ;;  %v522_v44 = vrot.slane %v505_v39, 5  ;;  %v523_v7 = vrot.slane %v509_v14, 5 }
  0x8f   : > { %v626_v49 = vmul.f32 %v618_v10, %v2298_v47  ;;  %v1043_v58 = vadd.f32 %v1035_v13, %v1030_v3  ;;  %v286_v12 = vsel %vm283_vm1, %v284_v8, %v285_v21  ;;  %v639_v31 = vrot.slane %v622_v61, 4  ;;  %v3010_v10 = vld [vmem:[#allocation2_spill] sm:$0xff] }
  0x90   : > { %v735_v2 = vperm.slane %v206_v52, 4  ;;  %v300_v17 = vadd.f32 %v286_v12, %v218_v50  ;;  %v407_v46 = vsel %vm404_vm2, %v405_v4, %v406_v9  ;;  %v524_v23 = vsel %vm521_vm3, %v522_v44, %v523_v7  ;;  %v3011_v4 = vld [vmem:[#allocation3_spill] sm:$0xff]  ;;  %v3012_v7 = vld [vmem:[#allocation4_spill] sm:$0xff] }
  0x91   : > { %v640_v37 = vrot.slane %v626_v49, 4  ;;  %1180 = vmatmul.f32.gmra.mxu2 %v1043_v58  ;;  %v852_v27 = vperm.slane %v206_v52, 5  ;;  %v1020_v51 = vperm.slane %v2552_v40, 0  ;;  %v1033_v42 = vperm.slane %v2562_v20, 0  ;;  %v3013_v58 = vld [vmem:[#allocation5_spill] sm:$0xff] }
  0x92   : > { %v739_v26 = vmul.f32 %v735_v2, %v2303_v57  ;;  %v743_v47 = vmul.f32 %v735_v2, %v2309_v6  ;;  %v421_v22 = vadd.f32 %v407_v46, %v300_v17  ;;  %v217_v13 = vperm.slane %v205_v11, 7  ;;  %v3015_v46 = vld [vmem:[#allocation7_spill] sm:$0xff] }
  0x93   : > { %v641_v38 = vsel %vm638_vm4, %v639_v31, %v640_v37  ;;  %v856_v25 = vmul.f32 %v852_v27, %v2321_v32  ;;  %v860_v57 = vmul.f32 %v852_v27, %v2324_v33  ;;  %v266_v56 = vperm.slane %v209_v28, 0  ;;  %v3014_v31 = vld [vmem:[#allocation6_spill] sm:$0xff]  ;;  %v3016_v37 = vld [vmem:[#allocation8_spill] sm:$0xff] }
  0x94   : > { %v756_v54 = vrot.slane %v739_v26, 3  ;;  %v757_v63 = vrot.slane %v743_v47, 3  ;;  %v538_v6 = vadd.f32 %v524_v23, %v421_v22  ;;  %v221_v52 = vmul.f32 %v217_v13, %v2336_v0  ;;  %v203_v47 = vld [vmem:[%s2967_s1 + $0x8] sm:$0x80] }
  0x95   : > { %v387_v60 = vperm.slane %v209_v28, 1  ;;  %v873_v50 = vrot.slane %v856_v25, 2  ;;  %v874_v48 = vrot.slane %v860_v57, 2  ;;  %v504_v35 = vperm.slane %v209_v28, 2 }
  0x96   : > { %v758_v36 = vsel %vm755_vm5, %v756_v54, %v757_v63  ;;  %v655_v45 = vadd.f32 %v641_v38, %v538_v6  ;;  %v270_v55 = vmul.f32 %v266_v56, %v2349_v18  ;;  %v274_v53 = vmul.f32 %v266_v56, %v2352_v24  ;;  %v207_v38 = vld [vmem:[%s2967_s1 + $0x28] sm:$0x3f] }
  0x97   : > { %v391_v1 = vmul.f32 %v387_v60, %v2362_v43  ;;  %v875_v32 = vsel %vm872_vm6, %v873_v50, %v874_v48  ;;  %v395_v33 = vmul.f32 %v387_v60, %v2365_v59  ;;  %v508_v0 = vmul.f32 %v504_v35, %v2369_v30  ;;  %v3017_v48 = vld [vmem:[#allocation9_spill] sm:$0xff] }
  0x98   : > { %v512_v15 = vmul.f32 %v504_v35, %v3010_v10  ;;  %v772_v62 = vadd.f32 %v758_v36, %v655_v45  ;;  %v293_v16 = vrot.slane %v270_v55, 7  ;;  %v294_v29 = vrot.slane %v274_v53, 7 }
  0x99   : > { %v414_v19 = vrot.slane %v391_v1, 6  ;;  %v415_v39 = vrot.slane %v395_v33, 6  ;;  %v531_v14 = vrot.slane %v508_v0, 5  ;;  %v621_v18 = vperm.slane %v209_v28, 3  ;;  %v3019_v0 = vld [vmem:[#allocation11_spill] sm:$0xff] }
  0x9a   : > { %v532_v61 = vrot.slane %v512_v15, 5  ;;  %v889_v3 = vadd.f32 %v875_v32, %v772_v62  ;;  %v295_v24 = vsel %vm283_vm1, %v293_v16, %v294_v29  ;;  %v738_v43 = vperm.slane %v209_v28, 4  ;;  %v3018_v32 = vld [vmem:[#allocation10_spill] sm:$0xff]  ;;  %v3020_v62 = vld [vmem:[#allocation12_spill] sm:$0xff]  ;;  %v3021_v29 = vld [vmem:[#allocation13_spill] sm:$0xff] }
  0x9b   : > { %v855_v8 = vperm.slane %v209_v28, 5  ;;  %v303_v21 = vadd.f32 %v295_v24, %v221_v52  ;;  %v416_v59 = vsel %vm404_vm2, %v414_v19, %v415_v39  ;;  %v625_v9 = vmul.f32 %v621_v18, %v3011_v4  ;;  %v3022_v39 = vld [vmem:[#allocation14_spill] sm:$0xff]  ;;  %v3024_v4 = vld [vmem:[#allocation16_spill] sm:$0xff] }
  0x9c   : > { %v533_v30 = vsel %vm521_vm3, %v531_v14, %v532_v61  ;;  %v1028_v44 = vmul.f32 %v1020_v51, %v889_v3  ;;  %v629_v49 = vmul.f32 %v621_v18, %v3012_v7  ;;  %v742_v12 = vmul.f32 %v738_v43, %v3013_v58  ;;  %v3023_v61 = vld [vmem:[#allocation15_spill] sm:$0xff] }
  0x9d   : > { %v746_v2 = vmul.f32 %v738_v43, %v3014_v31  ;;  %v424_v11 = vadd.f32 %v416_v59, %v303_v21  ;;  %v648_v17 = vrot.slane %v625_v9, 4  ;;  %v859_v23 = vmul.f32 %v855_v8, %v3015_v46  ;;  %v3026_v46 = vld [vmem:[#allocation18_spill] sm:$0xff] }
  0x9e   : > { %v863_v26 = vmul.f32 %v855_v8, %v3016_v37  ;;  %v1041_v27 = vadd.f32 %v1033_v42, %v1028_v44  ;;  %v649_v28 = vrot.slane %v629_v49, 4  ;;  %v765_v22 = vrot.slane %v742_v12, 3  ;;  %v3025_v49 = vld [vmem:[#allocation17_spill] sm:$0xff] }
  0x9f   : > { %v766_v51 = vrot.slane %v746_v2, 3  ;;  %v541_v13 = vadd.f32 %v533_v30, %v424_v11  ;;  %v882_v54 = vrot.slane %v859_v23, 2  ;;  %v1023_v25 = vperm.slane %v2552_v40, 3 }
  0xa0   : > { %v883_v63 = vrot.slane %v863_v26, 2  ;;  %1134 = vmatmul.f32.gmra.mxu0 %v1041_v27  ;;  %v650_v57 = vsel %vm638_vm4, %v648_v17, %v649_v28  ;;  %v1036_v52 = vperm.slane %v2562_v20, 3  ;;  %v215_v42 = vperm.slane %v203_v47, 7 }
  0xa1   : > { %v767_v6 = vsel %vm755_vm5, %v765_v22, %v766_v51  ;;  %v658_v56 = vadd.f32 %v650_v57, %v541_v13  ;;  %v264_v36 = vperm.slane %v207_v38, 0  ;;  %v385_v50 = vperm.slane %v207_v38, 1 }
  0xa2   : > { %v884_v60 = vsel %vm872_vm6, %v882_v54, %v883_v63  ;;  %v219_v35 = vmul.f32 %v215_v42, %v3017_v48  ;;  %v502_v45 = vperm.slane %v207_v38, 2  ;;  %v619_v55 = vperm.slane %v207_v38, 3 }
  0xa3   : > { %v736_v53 = vperm.slane %v207_v38, 4  ;;  %v775_v1 = vadd.f32 %v767_v6, %v658_v56  ;;  %v268_v33 = vmul.f32 %v264_v36, %v3018_v32  ;;  %v272_v10 = vmul.f32 %v264_v36, %v3019_v0 }
  0xa4   : > { %v389_v15 = vmul.f32 %v385_v50, %v2451_v41  ;;  %v393_v16 = vmul.f32 %v385_v50, %v3020_v62  ;;  %v506_v19 = vmul.f32 %v502_v45, %v3021_v29  ;;  %v510_v14 = vmul.f32 %v502_v45, %v3022_v39  ;;  %v1876_v50 = vld [vmem:[%s2968_s2 + $0x200] ss:$0 sm:$0xff]  ;;  %v1220_v29 = vld [vmem:[%s2969_s3 + $0x18] sm:$0xff] }
  0xa5   : > { %v623_v18 = vmul.f32 %v619_v55, %v3023_v61  ;;  %v892_v3 = vadd.f32 %v884_v60, %v775_v1  ;;  %v287_v24 = vrot.slane %v268_v33, 7  ;;  %v288_v43 = vrot.slane %v272_v10, 7  ;;  %v1217_v39 = vld [vmem:[%s2969_s3] sm:$0xff]  ;;  %v1231_v61 = vld [vmem:[%s2969_s3 + $0x70] sm:$0xff] }
  0xa6   : > { %v408_v8 = vrot.slane %v389_v15, 6  ;;  %v409_v21 = vrot.slane %v393_v16, 6  ;;  %v525_v59 = vrot.slane %v506_v19, 5  ;;  %v526_v30 = vrot.slane %v510_v14, 5  ;;  %v1219_v16 = vld [vmem:[%s2969_s3 + $0x10] sm:$0xff]  ;;  %v1218_v14 = vld [vmem:[%s2969_s3 + $0x8] sm:$0xff] }
  0xa7   : > { %v627_v9 = vmul.f32 %v619_v55, %v3024_v4  ;;  %v1031_v44 = vmul.f32 %v1023_v25, %v892_v3  ;;  %v289_v41 = vsel %vm283_vm1, %v287_v24, %v288_v43  ;;  %v642_v7 = vrot.slane %v623_v18, 4  ;;  %v1232_v18 = vld [vmem:[%s2969_s3 + $0x78] sm:$0xff]  ;;  %v1229_v3 = vld [vmem:[%s2969_s3 + $0x60] sm:$0xff]  ;;  %v1230_v24 = vld [vmem:[%s2969_s3 + $0x68] sm:$0xff] }
  0xa8   : > { %v740_v58 = vmul.f32 %v736_v53, %v3025_v49  ;;  %v301_v12 = vadd.f32 %v289_v41, %v219_v35  ;;  %v410_v31 = vsel %vm404_vm2, %v408_v8, %v409_v21  ;;  %v527_v2 = vsel %vm521_vm3, %v525_v59, %v526_v30  ;;  %v1223_v43 = vld [vmem:[%s2969_s3 + $0x30] sm:$0xff]  ;;  %v1224_v8 = vld [vmem:[%s2969_s3 + $0x38] sm:$0xff]  ;;  %v1221_v21 = vld [vmem:[%s2969_s3 + $0x20] sm:$0xff] }
  0xa9   : > { %v643_v11 = vrot.slane %v627_v9, 4  ;;  %v1044_v17 = vadd.f32 %v1036_v52, %v1031_v44  ;;  %v744_v23 = vmul.f32 %v736_v53, %v3026_v46  ;;  %v853_v26 = vperm.slane %v207_v38, 5  ;;  %v1222_v59 = vld [vmem:[%s2969_s3 + $0x28] sm:$0xff] }
  0xaa   : > { %v759_v37 = vrot.slane %v740_v58, 3  ;;  %v422_v47 = vadd.f32 %v410_v31, %v301_v12  ;;  %v1021_v38 = vperm.slane %v2552_v40, 1  ;;  %v1034_v56 = vperm.slane %v2562_v20, 1  ;;  %v1225_v40 = vld [vmem:[%s2969_s3 + $0x40] sm:$0xff]  ;;  %v1226_v20 = vld [vmem:[%s2969_s3 + $0x48] sm:$0xff] }
  0xab   : > { %1203 = vmatmul.f32.gmra.mxu3 %v1044_v17  ;;  %v644_v27 = vsel %vm638_vm4, %v642_v7, %v643_v11  ;;  %v760_v28 = vrot.slane %v744_v23, 3  ;;  %v857_v22 = vmul.f32 %v853_v26, %v2503_v34  ;;  %v861_v51 = vmul.f32 %v853_v26, %v2506_v5  ;;  %v1227_v5 = vld [vmem:[%s2969_s3 + $0x50] sm:$0xff]  ;;  %v1228_v34 = vld [vmem:[%s2969_s3 + $0x58] sm:$0xff]  ;;  %1275 = vmatpush.msrb.mxu0 %v1225_v40 }
  0xac   : > { %v539_v13 = vadd.f32 %v527_v2, %v422_v47  ;;  %1319 = vmatpush.msrb.mxu2 %v1227_v5  ;;  %1341 = vmatpush.msrb.mxu3 %v1228_v34  ;;  %v1839_v46 = vld [vmem:[%s2969_s3 + $0x80] ss:$8 sm:$0xf] }
  0xad   : > { %v761_v54 = vsel %vm755_vm5, %v759_v37, %v760_v28  ;;  %v876_v63 = vrot.slane %v857_v22, 2  ;;  %v877_v25 = vrot.slane %v861_v51, 2  ;;  %1297 = vmatpush.msrb.mxu1 %v1226_v20  ;;  %1276 = vmatpush.msrb.mxu0 %v1217_v39  ;;  %v1840_v23 = vld [vmem:[%s2969_s3 + $0x80] ss:$8 sm:$0xf0] }
  0xae   : > { %v656_v57 = vadd.f32 %v644_v27, %v539_v13  ;;  %1320 = vmatpush.msrb.mxu2 %v1219_v16  ;;  %1342 = vmatpush.msrb.mxu3 %v1220_v29  ;;  %v1236_v37 = vor.u32 %v1840_v23, %v1839_v46 }
  0xaf   : > { %v878_v6 = vsel %vm872_vm6, %v876_v63, %v877_v25  ;;  %1298 = vmatpush.msrb.mxu1 %v1218_v14  ;;  %1363 = vmatpush.msra.mxu0 %v1229_v3 }
  0xb0   : > { %v773_v52 = vadd.f32 %v761_v54, %v656_v57  ;;  %1407 = vmatpush.msra.mxu2 %v1231_v61  ;;  %1429 = vmatpush.msra.mxu3 %v1232_v18  ;;  %v1238_v26 = vperm.slane %v1236_v37, 0  ;;  %v1239_v22 = vperm.slane %v1236_v37, 1  ;;  %v1241_v29 = vperm.slane %v1236_v37, 3 }
  0xb1   : > { %1385 = vmatpush.msra.mxu1 %v1230_v24  ;;  %1364 = vmatpush.msra.mxu0 %v1221_v21  ;;  %v1245_v18 = vperm.slane %v1236_v37, 7 }
  0xb2   : > { %v890_v42 = vadd.f32 %v878_v6, %v773_v52  ;;  %1408 = vmatpush.msra.mxu2 %v1223_v43  ;;  %1430 = vmatpush.msra.mxu3 %v1224_v8  ;;  %v1240_v52 = vperm.slane %v1236_v37, 2 }
  0xb3   : > { %1386 = vmatpush.msra.mxu1 %v1222_v59 }
  0xb4   : > { %v1029_v60 = vmul.f32 %v1021_v38, %v890_v42 }
  0xb6   : > { %v1042_v36 = vadd.f32 %v1034_v56, %v1029_v60 }
  0xb8   : > { %1157 = vmatmul.f32.gmra.mxu1 %v1042_v36 }
  0xc5   : > { %v1178_v55 = vpop.f32.mrf.mxu2 }
  0xd9   : > { %v1132_v48 = vpop.f32.mrf.mxu0 }
  0xda   : > { %v1133_v35 = vadd.f32 %v1876_v50, %v1132_v48  ;;  %v1242_v48 = vperm.slane %v1236_v37, 4 }
  0xf9   : > { %v1201_v1 = vpop.f32.mrf.mxu3 }
 0x10b   : > { %v1155_v45 = vpop.f32.mrf.mxu1 }
 0x10c   : > { %v1156_v53 = vadd.f32 %v1155_v45, %v1133_v35  ;;  %v1243_v35 = vperm.slane %v1236_v37, 5 }
 0x10e   : > { %v1179_v32 = vadd.f32 %v1178_v55, %v1156_v53 }
 0x110   : > { %v1202_v33 = vadd.f32 %v1201_v1, %v1179_v32 }
 0x112   : > { %v1207_v0 = vadd.f32 3.0, %v1202_v33 }
 0x114   : > { %v1209_v10 = vmax.f32 %v1207_v0, 0.0  ;;  %v1181_v44 = vpop.f32.mrf.mxu2 }
 0x116   : > { %v1211_v15 = vmin.f32 %v1209_v10, 6.0 }
 0x118   : > { %v1213_v62 = vmul.f32 0.16666667, %v1211_v15 }
 0x11a   : > { %v1215_v19 = vmul.f32 %v1213_v62, %v1202_v33  ;;  %v1244_v62 = vperm.slane %v1236_v37, 6 }
 0x11c   : > { %1841 = vmatmul.msk.f32.vlgmr.msrb.gmra.mxu0 %vm1254_vm7, %v1215_v19  ;;  %1843 = vmatmul.msk.f32.vlgmr.msrb.gmra.mxu1 %vm1254_vm7, %v1215_v19 }
 0x11d   : > { %1845 = vmatmul.msk.f32.vlgmr.msrb.gmra.mxu2 %vm1254_vm7, %v1215_v19  ;;  %1847 = vmatmul.msk.f32.vlgmr.msrb.gmra.mxu3 %vm1254_vm7, %v1215_v19  ;;  %v1135_v30 = vpop.f32.mrf.mxu0 }
 0x11e   : > { %v1136_v4 = vadd.f32 %v1876_v50, %v1135_v30 }
 0x12e   : > { %v1204_v7 = vpop.f32.mrf.mxu3 }
 0x135   : > { %v1158_v9 = vpop.f32.mrf.mxu1 }
 0x136   : > { %v1159_v41 = vadd.f32 %v1158_v9, %v1136_v4 }
 0x138   : > { %v1182_v49 = vadd.f32 %v1181_v44, %v1159_v41 }
 0x13a   : > { %v1205_v58 = vadd.f32 %v1204_v7, %v1182_v49 }
 0x13c   : > { %v1208_v12 = vadd.f32 3.0, %v1205_v58 }
 0x13e   : > { %v1210_v31 = vmax.f32 %v1208_v12, 0.0 }
 0x140   : > { %v1212_v2 = vmin.f32 %v1210_v31, 6.0 }
 0x142   : > { %v1214_v11 = vmul.f32 0.16666667, %v1212_v2 }
 0x144   : > { %v1216_v17 = vmul.f32 %v1214_v11, %v1205_v58 }
 0x146   : > { %1842 = vmatmul.msk.f32.gmra.mxu0 %vm1254_vm7, %v1216_v17  ;;  %1844 = vmatmul.msk.f32.gmra.mxu1 %vm1254_vm7, %v1216_v17 }
 0x147   : > { %1846 = vmatmul.msk.f32.gmra.mxu2 %vm1254_vm7, %v1216_v17  ;;  %1848 = vmatmul.msk.f32.gmra.mxu3 %vm1254_vm7, %v1216_v17 }
 0x14e   : > { %1849 = vmatmul.msk.f32.vlgmr.msra.gmra.mxu0 %vm1254_vm7, %v1215_v19  ;;  %1851 = vmatmul.msk.f32.vlgmr.msra.gmra.mxu1 %vm1254_vm7, %v1215_v19 }
 0x14f   : > { %1853 = vmatmul.msk.f32.vlgmr.msra.gmra.mxu2 %vm1254_vm7, %v1215_v19  ;;  %1855 = vmatmul.msk.f32.vlgmr.msra.gmra.mxu3 %vm1254_vm7, %v1215_v19 }
 0x156   : > { %1850 = vmatmul.msk.f32.gmra.mxu0 %vm1254_vm7, %v1216_v17  ;;  %1852 = vmatmul.msk.f32.gmra.mxu1 %vm1254_vm7, %v1216_v17 }
 0x157   : > { %1854 = vmatmul.msk.f32.gmra.mxu2 %vm1254_vm7, %v1216_v17  ;;  %1856 = vmatmul.msk.f32.gmra.mxu3 %vm1254_vm7, %v1216_v17 }
 0x199   : > { %v1278_v47 = vpop.f32.mrf.mxu0  ;;  %v1300_v27 = vpop.f32.mrf.mxu1 }
 0x19a   : > { %v1279_v28 = vadd.f32 %v1278_v47, %v1238_v26  ;;  %v1301_v13 = vadd.f32 %v1300_v27, %v1239_v22 }
 0x19c   : > { %v1857_v51 = vmul.f32 -1.442695, %v1279_v28  ;;  %v1858_v25 = vmul.f32 -1.442695, %v1301_v13 }
 0x19e   : > { %1877 = vpow2.f32 %v1857_v51 }
 0x19f   : > { %1879 = vpow2.f32 %v1858_v25 }
 0x1a0   : > { %v1322_v54 = vpop.f32.mrf.mxu2  ;;  %v1344_v63 = vpop.f32.mrf.mxu3 }
 0x1a1   : > { %v1323_v36 = vadd.f32 %v1322_v54, %v1240_v52  ;;  %v1345_v43 = vadd.f32 %v1344_v63, %v1241_v29 }
 0x1a3   : > { %v1859_v20 = vmul.f32 -1.442695, %v1323_v36  ;;  %v1860_v7 = vmul.f32 -1.442695, %v1345_v43 }
 0x1a4   : > { %v1878_v38 = vpop.eup %1877 }
 0x1a5   : > { %v2731_v60 = vadd.f32 1.0, %v1878_v38  ;;  %v1880_v40 = vpop.eup %1879 }
 0x1a6   : > { %v2734_v50 = vadd.f32 1.0, %v1880_v40 }
 0x1a7   : > { %1881 = vrcp.f32 %v2731_v60  ;;  %v1480_v2 = vand.u32 2147483648, %v2731_v60  ;;  %vm1474_vm9 = vweird.f32 %v2731_v60  ;;  %v1478_v23 = vand.u32 2147483647, %v2731_v60 }
 0x1a8   : > { %1883 = vpow2.f32 %v1859_v20  ;;  %v1493_v27 = vand.u32 2147483647, %v2734_v50  ;;  %v1495_v28 = vand.u32 2147483648, %v2734_v50  ;;  %vm1489_vm13 = vweird.f32 %v2734_v50 }
 0x1a9   : > { %1885 = vrcp.f32 %v2734_v50  ;;  %v1481_v13 = vor.u32 1.1754944e-38, %v1480_v2  ;;  %vm1479_vm12 = vcmp.eq.f32.partialorder %v1478_v23, 8.507059e+37 }
 0x1aa   : > { %vm2783_vm15 = vcmp.eq.f32.partialorder %v1493_v27, 8.507059e+37 }
 0x1ad   : > { %v1882_v0 = vpop.eup %1881 }
 0x1ae   : > { %v1470_v16 = vmul.f32 %v1882_v0, %v2731_v60  ;;  %v1884_v19 = vpop.eup %1883  ;;  %vm1475_vm8 = vweird.f32 %v1882_v0 }
 0x1af   : > { %v2738_v39 = vpop.eup %1885  ;;  %v2740_v24 = vadd.f32 1.0, %v1884_v19  ;;  %vm2759_vm10 = vmor %vm1474_vm9, %vm1475_vm8 }
 0x1b0   : > { %v1471_v3 = vsub.f32 1.0, %v1470_v16  ;;  %v1485_v21 = vmul.f32 %v2738_v39, %v2734_v50  ;;  %vm1490_vm11 = vweird.f32 %v2738_v39 }
 0x1b1   : > { %vm2779_vm14 = vmor %vm1489_vm13, %vm1490_vm11  ;;  %vm1504_vm9 = vweird.f32 %v2740_v24 }
 0x1b2   : > { %v1472_v41 = vmul.f32 %v1882_v0, %v1471_v3  ;;  %v1486_v58 = vsub.f32 1.0, %v1485_v21 }
 0x1b4   : > { %v1473_v31 = vadd.f32 %v1882_v0, %v1472_v41  ;;  %v1487_v17 = vmul.f32 %v2738_v39, %v1486_v58 }
 0x1b6   : > { %v1477_v51 = vsel %vm2759_vm10, %v1882_v0, %v1473_v31  ;;  %v1488_v63 = vadd.f32 %v2738_v39, %v1487_v17 }
 0x1b7   : > { %v1482_v38 = vsel %vm1479_vm12, %v1481_v13, %v1477_v51  ;;  %v1508_v13 = vand.u32 2147483647, %v2740_v24 }
 0x1b8   : > { %v1492_v50 = vsel %vm2779_vm14, %v2738_v39, %v1488_v63  ;;  %v1657_v0 = vperm.slane %v1482_v38, 3 }
 0x1b9   : > { %vm1509_vm12 = vcmp.eq.f32.partialorder %v1508_v13, 8.507059e+37 }
 0x1c3   : > { %v1281_v57 = vpop.f32.mrf.mxu0  ;;  %v1303_v6 = vpop.f32.mrf.mxu1 }
 0x1ca   : > { %v1325_v42 = vpop.f32.mrf.mxu2  ;;  %v1347_v56 = vpop.f32.mrf.mxu3 }
 0x1cb   : > { %v1366_v5 = vpop.f32.mrf.mxu0  ;;  %v1388_v34 = vpop.f32.mrf.mxu1 }
 0x1cc   : > { %v1496_v5 = vor.u32 1.1754944e-38, %v1495_v28 }
 0x1ce   : > { %v2824_v41 = vsel %vm2783_vm15, %v1496_v5, %v1492_v50 }
 0x1cf   : > { %v1602_v47 = vperm.slane %v2824_v41, 1  ;;  %v1630_v51 = vperm.slane %v2824_v41, 2 }
 0x1d2   : > { %v1410_v45 = vpop.f32.mrf.mxu2  ;;  %v1432_v55 = vpop.f32.mrf.mxu3 }
 0x1d3   : > { %v1368_v53 = vpop.f32.mrf.mxu0  ;;  %v1390_v1 = vpop.f32.mrf.mxu1 }
 0x1d4   : > { %v1369_v32 = vadd.f32 %v1368_v53, %v1242_v48  ;;  %v1391_v33 = vadd.f32 %v1390_v1, %v1243_v35  ;;  %v1589_v53 = vperm.slane %v1482_v38, 0  ;;  %v1601_v1 = vperm.slane %v1482_v38, 1 }
 0x1d6   : > { %v1861_v10 = vmul.f32 -1.442695, %v1369_v32  ;;  %v1862_v15 = vmul.f32 -1.442695, %v1391_v33  ;;  %v1629_v33 = vperm.slane %v1482_v38, 2 }
 0x1d8   : > { %1887 = vpow2.f32 %v1861_v10  ;;  %v1685_v10 = vperm.slane %v1482_v38, 4 }
 0x1d9   : > { %1889 = vpow2.f32 %v1862_v15 }
 0x1da   : > { %v1412_v14 = vpop.f32.mrf.mxu2  ;;  %v1434_v8 = vpop.f32.mrf.mxu3 }
 0x1db   : > { %v1413_v61 = vadd.f32 %v1412_v14, %v1244_v62  ;;  %v1435_v44 = vadd.f32 %v1434_v8, %v1245_v18  ;;  %v1713_v8 = vperm.slane %v1482_v38, 5 }
 0x1dd   : > { %v1863_v59 = vmul.f32 -1.442695, %v1413_v61  ;;  %v1864_v12 = vmul.f32 -1.442695, %v1435_v44 }
 0x1de   : > { %v1888_v30 = vpop.eup %1887 }
 0x1df   : > { %v1890_v4 = vpop.eup %1889  ;;  %v2744_v9 = vadd.f32 1.0, %v1888_v30  ;;  %1891 = vpow2.f32 %v1863_v59  ;;  %v1741_v59 = vperm.slane %v1482_v38, 6  ;;  %v1686_v38 = vperm.slane %v2824_v41, 4 }
 0x1e0   : > { %1893 = vrcp.f32 %v2740_v24  ;;  %v2747_v49 = vadd.f32 1.0, %v1890_v4 }
 0x1e1   : > { %1895 = vrcp.f32 %v2744_v9  ;;  %v1540_v42 = vand.u32 2147483648, %v2744_v9  ;;  %v1538_v40 = vand.u32 2147483647, %v2744_v9  ;;  %vm1534_vm1 = vweird.f32 %v2744_v9 }
 0x1e2   : > { %1897 = vrcp.f32 %v2747_v49  ;;  %v1555_v16 = vand.u32 2147483648, %v2747_v49  ;;  %vm1549_vm5 = vweird.f32 %v2747_v49  ;;  %v1553_v21 = vand.u32 2147483647, %v2747_v49 }
 0x1e3   : > { %1899 = vpow2.f32 %v1860_v7  ;;  %v1541_v15 = vor.u32 1.1754944e-38, %v1540_v42  ;;  %vm1539_vm3 = vcmp.eq.f32.partialorder %v1538_v40, 8.507059e+37 }
 0x1e4   : > { %1901 = vpow2.f32 %v1864_v12  ;;  %v1556_v58 = vor.u32 1.1754944e-38, %v1555_v16  ;;  %vm1554_vm7 = vcmp.eq.f32.partialorder %v1553_v21, 8.507059e+37 }
 0x1e5   : > { %v1892_v11 = vpop.eup %1891 }
 0x1e6   : > { %v2753_v46 = vpop.eup %1893  ;;  %v2757_v37 = vadd.f32 1.0, %v1892_v11 }
 0x1e7   : > { %v1896_v26 = vpop.eup %1895  ;;  %v1500_v25 = vmul.f32 %v2753_v46, %v2740_v24  ;;  %vm1505_vm8 = vweird.f32 %v2753_v46 }
 0x1e8   : > { %v2765_v22 = vpop.eup %1897  ;;  %v1530_v54 = vmul.f32 %v1896_v26, %v2744_v9  ;;  %1903 = vrcp.f32 %v2757_v37  ;;  %vm1535_vm0 = vweird.f32 %v1896_v26  ;;  %vm2855_vm10 = vmor %vm1504_vm9, %vm1505_vm8  ;;  %vm1564_vm13 = vweird.f32 %v2757_v37 }
 0x1e9   : > { %v1545_v57 = vmul.f32 %v2765_v22, %v2747_v49  ;;  %v1900_v6 = vpop.eup %1899  ;;  %v1501_v48 = vsub.f32 1.0, %v1500_v25  ;;  %vm1536_vm2 = vmor %vm1534_vm1, %vm1535_vm0  ;;  %vm1550_vm4 = vweird.f32 %v2765_v22  ;;  %v1590_v25 = vperm.slane %v2824_v41, 0 }
 0x1ea   : > { %v1531_v52 = vsub.f32 1.0, %v1530_v54  ;;  %v1902_v20 = vpop.eup %1901  ;;  %v2791_v35 = vadd.f32 1.0, %v1900_v6  ;;  %vm2818_vm6 = vmor %vm1549_vm5, %vm1550_vm4 }
 0x1eb   : > { %v1546_v56 = vsub.f32 1.0, %v1545_v57  ;;  %v2799_v29 = vadd.f32 1.0, %v1902_v20  ;;  %v1502_v7 = vmul.f32 %v2753_v46, %v1501_v48  ;;  %v1510_v57 = vand.u32 2147483648, %v2740_v24 }
 0x1ec   : > { %v1532_v34 = vmul.f32 %v1896_v26, %v1531_v52  ;;  %1905 = vrcp.f32 %v2791_v35  ;;  %v1658_v52 = vperm.slane %v2824_v41, 3  ;;  %v1570_v20 = vand.u32 2147483648, %v2757_v37 }
 0x1ed   : > { %v1547_v45 = vmul.f32 %v2765_v22, %v1546_v56  ;;  %1907 = vrcp.f32 %v2799_v29  ;;  %v1503_v27 = vadd.f32 %v2753_v46, %v1502_v7  ;;  %v1511_v48 = vor.u32 1.1754944e-38, %v1510_v57 }
 0x1ee   : > { %v2794_v55 = vpop.eup %1903  ;;  %v1533_v32 = vadd.f32 %v1896_v26, %v1532_v34  ;;  %v1571_v16 = vor.u32 1.1754944e-38, %v1570_v20  ;;  %vm1519_vm1 = vweird.f32 %v2791_v35  ;;  %v1525_v44 = vand.u32 2147483648, %v2791_v35 }
 0x1ef   : > { %v1548_v39 = vadd.f32 %v2765_v22, %v1547_v45  ;;  %v1560_v14 = vmul.f32 %v2794_v55, %v2757_v37  ;;  %v1507_v24 = vsel %vm2855_vm10, %v2753_v46, %v1503_v27  ;;  %vm1565_vm11 = vweird.f32 %v2794_v55 }
 0x1f0   : > { %v1537_v62 = vsel %vm1536_vm2, %v1896_v26, %v1533_v32  ;;  %v1568_v46 = vand.u32 2147483647, %v2757_v37  ;;  %v1714_v45 = vperm.slane %v2824_v41, 5  ;;  %vm2879_vm14 = vmor %vm1564_vm13, %vm1565_vm11  ;;  %v1523_v7 = vand.u32 2147483647, %v2791_v35 }
 0x1f1   : > { %v1542_v19 = vsel %vm1539_vm3, %v1541_v15, %v1537_v62  ;;  %v1552_v49 = vsel %vm2818_vm6, %v2765_v22, %v1548_v39  ;;  %v1561_v2 = vsub.f32 1.0, %v1560_v14  ;;  %vm1579_vm4 = vweird.f32 %v2799_v29 }
 0x1f2   : > { %v1593_v61 = vmul.f32 %v1589_v53, %v1542_v19  ;;  %v1605_v18 = vmul.f32 %v1601_v1, %v1542_v19  ;;  %v1633_v3 = vmul.f32 %v1629_v33, %v1542_v19  ;;  %v1661_v43 = vmul.f32 %v1657_v0, %v1542_v19  ;;  %v2834_v26 = vpop.eup %1905 }
 0x1f3   : > { %v1689_v9 = vmul.f32 %v1685_v10, %v1542_v19  ;;  %v1717_v31 = vmul.f32 %v1713_v8, %v1542_v19  ;;  %v1745_v17 = vmul.f32 %v1741_v59, %v1542_v19  ;;  %v1557_v23 = vsel %vm1554_vm7, %v1556_v58, %v1552_v49  ;;  %v2845_v63 = vpop.eup %1907 }
 0x1f4   : > { %1597 = vst [vmem:[%s2806_s12] sm:$0x7f] %v1593_v61  ;;  %v1613_v30 = vrot.slane %v1605_v18, 1  ;;  %v1641_v4 = vrot.slane %v1633_v3, 2  ;;  %v1669_v12 = vrot.slane %v1661_v43, 3  ;;  %v1562_v22 = vmul.f32 %v2794_v55, %v1561_v2 }
 0x1f5   : > { %v1697_v11 = vrot.slane %v1689_v9, 4  ;;  %v1725_v28 = vrot.slane %v1717_v31, 5  ;;  %v1606_v54 = vmul.f32 %v1602_v47, %v1557_v23  ;;  %v1753_v6 = vrot.slane %v1745_v17, 6 }
 0x1f6   : > { %1621 = vst [vmem:[%s2806_s12] sm:$0x80] %v1613_v30  ;;  %v1515_v56 = vmul.f32 %v2834_v26, %v2791_v35  ;;  %v1634_v60 = vmul.f32 %v1630_v51, %v1557_v23  ;;  %v1594_v36 = vmul.f32 %v1590_v25, %v1557_v23  ;;  %v1563_v5 = vadd.f32 %v2794_v55, %v1562_v22 }
 0x1f7   : > { %1625 = vst [vmem:[%s2806_s12 + $0x20] sm:$0x3f] %v1613_v30  ;;  %v1614_v34 = vrot.slane %v1606_v54, 1  ;;  %v1662_v40 = vmul.f32 %v1658_v52, %v1557_v23  ;;  %v1575_v50 = vmul.f32 %v2845_v63, %v2799_v29  ;;  %v1690_v32 = vmul.f32 %v1686_v38, %v1557_v23 }
 0x1f8   : > { %1649 = vst [vmem:[%s2806_s12 + $0x20] sm:$0xc0] %v1641_v4  ;;  %v1516_v53 = vsub.f32 1.0, %v1515_v56  ;;  %v1642_v1 = vrot.slane %v1634_v60, 2  ;;  %v1742_v0 = vperm.slane %v2824_v41, 6  ;;  %v2884_v10 = vsel %vm1509_vm12, %v1511_v48, %v1507_v24 }
 0x1f9   : > { %1653 = vst [vmem:[%s2806_s12 + $0x40] sm:$0x1f] %v1641_v4  ;;  %v1567_v37 = vsel %vm2879_vm14, %v2794_v55, %v1563_v5  ;;  %v1670_v15 = vrot.slane %v1662_v40, 3  ;;  %v1718_v62 = vmul.f32 %v1714_v45, %v1557_v23  ;;  %v1576_v19 = vsub.f32 1.0, %v1575_v50 }
 0x1fa   : > { %1677 = vst [vmem:[%s2806_s12 + $0x40] sm:$0xe0] %v1669_v12  ;;  %vm1569_vm15 = vcmp.eq.f32.partialorder %v1568_v46, 8.507059e+37  ;;  %v1517_v39 = vmul.f32 %v2834_v26, %v1516_v53  ;;  %v1698_v14 = vrot.slane %v1690_v32, 4  ;;  %v1746_v61 = vmul.f32 %v1742_v0, %v1557_v23 }
 0x1fb   : > { %1681 = vst [vmem:[%s2806_s12 + $0x60] sm:$0xf] %v1669_v12  ;;  %v1572_v18 = vsel %vm1569_vm15, %v1571_v16, %v1567_v37  ;;  %v1603_v3 = vperm.slane %v2884_v10, 1  ;;  %v1726_v55 = vrot.slane %v1718_v62, 5  ;;  %v1577_v43 = vmul.f32 %v2845_v63, %v1576_v19 }
 0x1fc   : > { %1705 = vst [vmem:[%s2806_s12 + $0x60] sm:$0xf0] %v1697_v11  ;;  %v1631_v8 = vperm.slane %v2884_v10, 2  ;;  %v1591_v59 = vperm.slane %v2884_v10, 0  ;;  %v1518_v30 = vadd.f32 %v2834_v26, %v1517_v39  ;;  %vm1520_vm0 = vweird.f32 %v2834_v26 }
 0x1fd   : > { %1709 = vst [vmem:[%s2806_s12 + $0x80] sm:$0x7] %v1697_v11  ;;  %v1607_v21 = vmul.f32 %v1603_v3, %v1572_v18  ;;  %v1754_v4 = vrot.slane %v1746_v61, 6  ;;  %v1659_v9 = vperm.slane %v2884_v10, 3  ;;  %v1578_v58 = vadd.f32 %v2845_v63, %v1577_v43  ;;  %vm2913_vm3 = vmor %vm1519_vm1, %vm1520_vm0 }
 0x1fe   : > { %1733 = vst [vmem:[%s2806_s12 + $0x80] sm:$0xf8] %v1725_v28  ;;  %v1635_v41 = vmul.f32 %v1631_v8, %v1572_v18  ;;  %v1595_v49 = vmul.f32 %v1591_v59, %v1572_v18  ;;  %vm1580_vm2 = vweird.f32 %v2845_v63  ;;  %v1687_v12 = vperm.slane %v2884_v10, 4 }
 0x1ff   : > { %1737 = vst [vmem:[%s2806_s12 + $0xa0] sm:$0x3] %v1725_v28  ;;  %v1615_v2 = vrot.slane %v1607_v21, 1  ;;  %v1663_v11 = vmul.f32 %v1659_v9, %v1572_v18  ;;  %v1585_v17 = vand.u32 2147483648, %v2799_v29  ;;  %v1522_v35 = vsel %vm2913_vm3, %v2834_v26, %v1518_v30  ;;  %vm2929_vm5 = vmor %vm1579_vm4, %vm1580_vm2 }
 0x200   : > { %1761 = vst [vmem:[%s2806_s12 + $0xa0] sm:$0xfc] %v1753_v6  ;;  %v1583_v23 = vand.u32 2147483647, %v2799_v29  ;;  %v1715_v47 = vperm.slane %v2884_v10, 5  ;;  %v1526_v27 = vor.u32 1.1754944e-38, %v1525_v44  ;;  %v1691_v22 = vmul.f32 %v1687_v12, %v1572_v18 }
 0x201   : > { %1765 = vst [vmem:[%s2806_s12 + $0xc0] sm:$0x1] %v1753_v6  ;;  %v1643_v28 = vrot.slane %v1635_v41, 2  ;;  %v1743_v26 = vperm.slane %v2884_v10, 6  ;;  %vm1524_vm6 = vcmp.eq.f32.partialorder %v1523_v7, 8.507059e+37  ;;  %v1582_v29 = vsel %vm2929_vm5, %v2845_v63, %v1578_v58 }
 0x202   : > { %1598 = vst [vmem:[%s2806_s12 + $0x8] sm:$0x7f] %v1594_v36  ;;  %v1527_v13 = vsel %vm1524_vm6, %v1526_v27, %v1522_v35  ;;  %v1671_v54 = vrot.slane %v1663_v11, 3  ;;  %v1719_v25 = vmul.f32 %v1715_v47, %v1572_v18  ;;  %v1586_v57 = vor.u32 1.1754944e-38, %v1585_v17 }
 0x203   : > { %1622 = vst [vmem:[%s2806_s12 + $0x8] sm:$0x80] %v1614_v34  ;;  %vm1584_vm7 = vcmp.eq.f32.partialorder %v1583_v23, 8.507059e+37  ;;  %v1699_v6 = vrot.slane %v1691_v22, 4  ;;  %v1747_v52 = vmul.f32 %v1743_v26, %v1572_v18  ;;  %v1604_v42 = vperm.slane %v1527_v13, 1 }
 0x204   : > { %1626 = vst [vmem:[%s2806_s12 + $0x28] sm:$0x3f] %v1614_v34  ;;  %v1587_v38 = vsel %vm1584_vm7, %v1586_v57, %v1582_v29  ;;  %v1727_v63 = vrot.slane %v1719_v25, 5  ;;  %v1632_v56 = vperm.slane %v1527_v13, 2  ;;  %v1592_v24 = vperm.slane %v1527_v13, 0 }
 0x205   : > { %1650 = vst [vmem:[%s2806_s12 + $0x28] sm:$0xc0] %v1642_v1  ;;  %v1608_v60 = vmul.f32 %v1604_v42, %v1587_v38  ;;  %v1755_v36 = vrot.slane %v1747_v52, 6  ;;  %v1660_v5 = vperm.slane %v1527_v13, 3  ;;  %v1688_v20 = vperm.slane %v1527_v13, 4 }
 0x206   : > { %1654 = vst [vmem:[%s2806_s12 + $0x48] sm:$0x1f] %v1642_v1  ;;  %v1636_v34 = vmul.f32 %v1632_v56, %v1587_v38  ;;  %v1596_v40 = vmul.f32 %v1592_v24, %v1587_v38  ;;  %v1716_v46 = vperm.slane %v1527_v13, 5  ;;  %v1744_v1 = vperm.slane %v1527_v13, 6 }
 0x207   : > { %1678 = vst [vmem:[%s2806_s12 + $0x48] sm:$0xe0] %v1670_v15  ;;  %v1616_v50 = vrot.slane %v1608_v60, 1  ;;  %v1664_v48 = vmul.f32 %v1660_v5, %v1587_v38  ;;  %v1692_v53 = vmul.f32 %v1688_v20, %v1587_v38 }
 0x208   : > { %1682 = vst [vmem:[%s2806_s12 + $0x68] sm:$0xf] %v1670_v15  ;;  %v1644_v45 = vrot.slane %v1636_v34, 2  ;;  %v1720_v33 = vmul.f32 %v1716_v46, %v1587_v38  ;;  %v1748_v10 = vmul.f32 %v1744_v1, %v1587_v38 }
 0x209   : > { %1706 = vst [vmem:[%s2806_s12 + $0x68] sm:$0xf0] %v1698_v14  ;;  %v1672_v32 = vrot.slane %v1664_v48, 3  ;;  %v1700_v0 = vrot.slane %v1692_v53, 4 }
 0x20a   : > { %1710 = vst [vmem:[%s2806_s12 + $0x88] sm:$0x7] %v1698_v14  ;;  %v1728_v37 = vrot.slane %v1720_v33, 5  ;;  %v1756_v15 = vrot.slane %v1748_v10, 6 }
 0x20b   : > { %1734 = vst [vmem:[%s2806_s12 + $0x88] sm:$0xf8] %v1726_v55 }
 0x20c   : > { %1738 = vst [vmem:[%s2806_s12 + $0xa8] sm:$0x3] %v1726_v55 }
 0x20d   : > { %1762 = vst [vmem:[%s2806_s12 + $0xa8] sm:$0xfc] %v1754_v4 }
 0x20e   : > { %1766 = vst [vmem:[%s2806_s12 + $0xc8] sm:$0x1] %v1754_v4 }
 0x20f   : > { %1599 = vst [vmem:[%s2806_s12 + $0x10] sm:$0x7f] %v1595_v49 }
 0x210   : > { %1623 = vst [vmem:[%s2806_s12 + $0x10] sm:$0x80] %v1615_v2 }
 0x211   : > { %1627 = vst [vmem:[%s2806_s12 + $0x30] sm:$0x3f] %v1615_v2 }
 0x212   : > { %1651 = vst [vmem:[%s2806_s12 + $0x30] sm:$0xc0] %v1643_v28 }
 0x213   : > { %1655 = vst [vmem:[%s2806_s12 + $0x50] sm:$0x1f] %v1643_v28 }
 0x214   : > { %1679 = vst [vmem:[%s2806_s12 + $0x50] sm:$0xe0] %v1671_v54 }
 0x215   : > { %1683 = vst [vmem:[%s2806_s12 + $0x70] sm:$0xf] %v1671_v54 }
 0x216   : > { %1707 = vst [vmem:[%s2806_s12 + $0x70] sm:$0xf0] %v1699_v6 }
 0x217   : > { %1711 = vst [vmem:[%s2806_s12 + $0x90] sm:$0x7] %v1699_v6 }
 0x218   : > { %1735 = vst [vmem:[%s2806_s12 + $0x90] sm:$0xf8] %v1727_v63 }
 0x219   : > { %1739 = vst [vmem:[%s2806_s12 + $0xb0] sm:$0x3] %v1727_v63 }
 0x21a   : > { %1763 = vst [vmem:[%s2806_s12 + $0xb0] sm:$0xfc] %v1755_v36 }
 0x21b   : > { %1767 = vst [vmem:[%s2806_s12 + $0xd0] sm:$0x1] %v1755_v36 }
 0x21c   : > { %1600 = vst [vmem:[%s2806_s12 + $0x18] sm:$0x7f] %v1596_v40 }
 0x21d   : > { %1624 = vst [vmem:[%s2806_s12 + $0x18] sm:$0x80] %v1616_v50 }
 0x21e   : > { %1628 = vst [vmem:[%s2806_s12 + $0x38] sm:$0x3f] %v1616_v50 }
 0x21f   : > { %1652 = vst [vmem:[%s2806_s12 + $0x38] sm:$0xc0] %v1644_v45 }
 0x220   : > { %1656 = vst [vmem:[%s2806_s12 + $0x58] sm:$0x1f] %v1644_v45 }
 0x221   : > { %1680 = vst [vmem:[%s2806_s12 + $0x58] sm:$0xe0] %v1672_v32 }
 0x222   : > { %1684 = vst [vmem:[%s2806_s12 + $0x78] sm:$0xf] %v1672_v32 }
 0x223   : > { %1708 = vst [vmem:[%s2806_s12 + $0x78] sm:$0xf0] %v1700_v0 }
 0x224   : > { %1712 = vst [vmem:[%s2806_s12 + $0x98] sm:$0x7] %v1700_v0 }
 0x225   : > { %1736 = vst [vmem:[%s2806_s12 + $0x98] sm:$0xf8] %v1728_v37 }
 0x226   : > { %1740 = vst [vmem:[%s2806_s12 + $0xb8] sm:$0x3] %v1728_v37 }
 0x227   : > { %1764 = vst [vmem:[%s2806_s12 + $0xb8] sm:$0xfc] %v1756_v15 }
 0x228   : > { %1768 = vst [vmem:[%s2806_s12 + $0xd8] sm:$0x1] %v1756_v15 }
 0x229 PF: > { %s14_s15 = sadd.s32 1, %s1915_s15  }
 0x22a   : > { %p11_p4 = scmp.ge.s32.totalorder %s14_s15, 4  }
 0x22c   :  { %13 = sbr.rel (!%p11_p4) target bundleno = 1 (0x1), region = 71 }

</bundles_post_ra>
